<compile_context>
chip_gen: v5e
topology: v5e:2x2
jax: 0.10.0
libtpu: 0.0.40
codegen_flags: <defaults>
</compile_context>

<pallas_src>
import functools

import jax
import jax.numpy as jnp
from jax import lax
from jax.experimental import pallas as pl
from jax.experimental.pallas import tpu as pltpu

# ----------------------------- config (small, deterministic) -----------------
BATCH = 2          # B
SEQ = 8            # T
INPUT_SIZE = 4     # I  (lstm input_size)
HIDDEN = 32        # H  (lstm hidden_size)
NUM_LAYERS = 2     # lstm num_layers (kernel hard-codes 2 layers)
FC_OUT = 2         # fc out_features (forward reshapes to (..., 2))


# ------------------------------- Pallas kernel -------------------------------
def tc_encoder_kernel(x_ref,                    # (B, T, I)   f32
                      wih0_ref,                 # (I, 4H)     bf16
                      whh0_ref,                 # (H, 4H)     bf16
                      b0_ref,                   # (1, 4H)     f32  (b_ih0 + b_hh0)
                      w1_ref,                   # (2H, 4H)    bf16 ([W_ih1; W_hh1])
                      b1_ref,                   # (1, 4H)     f32  (b_ih1 + b_hh1)
                      wfc_ref, bfc_ref,         # (H, 2) f32, (1, 2) f32
                      etc_ref,                  # (B, H)      f32
                      yfc_ref,                  # (B, T, 2)   f32
                      hn_ref, cn_ref,           # (2, B, H)   f32
                      y_buf):                   # scratch (B, T, H) f32
    B, T, _ = x_ref.shape
    H = whh0_ref.shape[0]
    f32 = jnp.float32
    bf16 = jnp.bfloat16

    # Hoist weight / bias loads out of the time loop (loaded once -> vregs).
    whh0 = whh0_ref[...]                        # (H, 4H) bf16
    w1 = w1_ref[...]                            # (2H, 4H) bf16
    b0 = b0_ref[...]                            # (1, 4H) f32
    b1 = b1_ref[...]                            # (1, 4H) f32

    # Precompute the layer-0 input projection for ALL timesteps in one MXU call:
    #   (B, T, I) . (I, 4H) -> (B, T, 4H)
    xproj = lax.dot_general(
        x_ref[...].astype(bf16), wih0_ref[...],
        dimension_numbers=(((2,), (0,)), ((), ())),
        preferred_element_type=f32)

    def gates(pre):
        # One wide sigmoid over all 4H lanes; single tanh on the g slice.
        # PyTorch gate order: i, f, g, o.
        s = jax.nn.sigmoid(pre)
        i = s[:, 0 * H:1 * H]
        f = s[:, 1 * H:2 * H]
        o = s[:, 3 * H:4 * H]
        g = jnp.tanh(pre[:, 2 * H:3 * H])
        return i, f, g, o

    zeros = jnp.zeros((B, H), f32)
    h0 = c0 = h1 = c1 = zeros
    etc_acc = zeros

    # T is a static Python int: fully unroll so independent work across steps
    # (layer-0 of t+1 vs layer-1 of t) can be co-issued by the scheduler.
    for t in range(T):
        # ---- layer 0: only the recurrent matmul remains on the chain -------
        pre0 = (xproj[:, t, :]
                + jnp.dot(h0.astype(bf16), whh0, preferred_element_type=f32)
                + b0)
        i0, f0, g0, o0 = gates(pre0)
        c0 = f0 * c0 + i0 * g0
        h0 = o0 * jnp.tanh(c0)

        # ---- layer 1: single fused matmul on [h0_t | h1_{t-1}] -------------
        h01 = jnp.concatenate([h0, h1], axis=1).astype(bf16)     # (B, 2H)
        pre1 = jnp.dot(h01, w1, preferred_element_type=f32) + b1
        i1, f1, g1, o1 = gates(pre1)
        c1 = f1 * c1 + i1 * g1
        h1 = o1 * jnp.tanh(c1)

        y_buf[:, t, :] = h1                      # static index, off the chain
        etc_acc = etc_acc + h1

    # ETC = mean over time (unsqueeze done in the wrapper)
    etc_ref[...] = etc_acc * (1.0 / T)

    # fc applied to every (b, t) hidden vector as one batched matmul, written
    # directly batch-first: (B, T, H) . (H, 2) -> (B, T, 2)
    yfc_ref[...] = lax.dot_general(
        y_buf[...], wfc_ref[...],
        dimension_numbers=(((2,), (0,)), ((), ())),
        preferred_element_type=f32) + bfc_ref[...]

    # Final states written straight to the outputs (no state scratch buffers).
    hn_ref[0] = h0
    hn_ref[1] = h1
    cn_ref[0] = c0
    cn_ref[1] = c1


# --------------------------------- wrapper -----------------------------------
@functools.partial(jax.jit, static_argnames=())
def tc_encoder_forward(x, params):
    """x: (B, T, I) float32 (batch_first). Returns (ETC, y, (hn, cn))."""
    B, T, _ = x.shape
    H = params["whh0"].shape[0]

    # bf16 MXU operands (f32 accumulation stays inside the kernel);
    # layer-1 weights stacked once so the kernel does a single fused matmul.
    wih0 = params["wih0"].astype(jnp.bfloat16)
    whh0 = params["whh0"].astype(jnp.bfloat16)
    w1 = jnp.concatenate([params["wih1"], params["whh1"]],
                         axis=0).astype(jnp.bfloat16)            # (2H, 4H)

    vmem = pl.BlockSpec(memory_space=pltpu.MemorySpace.VMEM)
    etc, yfc, hn, cn = pl.pallas_call(
        tc_encoder_kernel,
        out_shape=(
            jax.ShapeDtypeStruct((B, H), jnp.float32),             # ETC (pre-unsqueeze)
            jax.ShapeDtypeStruct((B, T, FC_OUT), jnp.float32),     # fc output
            jax.ShapeDtypeStruct((NUM_LAYERS, B, H), jnp.float32), # hn
            jax.ShapeDtypeStruct((NUM_LAYERS, B, H), jnp.float32), # cn
        ),
        in_specs=[vmem] * 8,
        out_specs=(vmem, vmem, vmem, vmem),
        scratch_shapes=[pltpu.VMEM((B, T, H), jnp.float32)],       # top-layer outputs
    )(x, wih0, whh0, params["b0"], w1, params["b1"],
      params["wfc"], params["bfc"])

    ETC = etc[:, None, :]                         # (B, 1, H)
    return ETC, yfc, (hn, cn)


# ------------------------- pure-JAX reference (for check) --------------------
def tc_encoder_ref(x, params, matmul_dtype=jnp.bfloat16):
    """Reference LSTM+FC. matmul_dtype=bf16 matches the kernel's MXU precision;
    matmul_dtype=f32 gives the exact PyTorch-style full-precision forward."""
    B, T, _ = x.shape
    H = params["whh0"].shape[0]
    md = matmul_dtype

    def mm(a, b):
        return jnp.dot(a.astype(md), b.astype(md),
                       preferred_element_type=jnp.float32)

    def cell(x_t, h, c, w_ih, w_hh, b):
        g = mm(x_t, w_ih) + mm(h, w_hh) + b
        i = jax.nn.sigmoid(g[:, 0 * H:1 * H])
        f = jax.nn.sigmoid(g[:, 1 * H:2 * H])
        gg = jnp.tanh(g[:, 2 * H:3 * H])
        o = jax.nn.sigmoid(g[:, 3 * H:4 * H])
        c_new = f * c + i * gg
        return o * jnp.tanh(c_new), c_new

    def scan_fn(carry, x_t):
        h0, c0, h1, c1 = carry
        h0, c0 = cell(x_t, h0, c0, params["wih0"], params["whh0"], params["b0"])
        h1, c1 = cell(h0, h1, c1, params["wih1"], params["whh1"], params["b1"])
        return (h0, c0, h1, c1), h1

    z = jnp.zeros((B, H), jnp.float32)
    carry, ys = lax.scan(scan_fn, (z, z, z, z), jnp.transpose(x, (1, 0, 2)))
    y = jnp.transpose(ys, (1, 0, 2))                               # (B, T, H)
    ETC = jnp.mean(y, axis=1, keepdims=True)                       # (B, 1, H)
    yfc = (y.reshape(-1, H) @ params["wfc"] + params["bfc"]).reshape(B, T, FC_OUT)
    hn = jnp.stack([carry[0], carry[2]])
    cn = jnp.stack([carry[1], carry[3]])
    return ETC, yfc, (hn, cn)


# ---------------------------------- params -----------------------------------
def init_params(key):
    """Deterministic init, PyTorch-style U(-1/sqrt(H), 1/sqrt(H)).

    Weights are stored pre-transposed for right-multiplication:
      wih_l: (in, 4H), whh_l: (H, 4H), b_l = b_ih + b_hh -> (1, 4H)
      wfc:   (H, 2),   bfc: (1, 2)
    """
    H, I = HIDDEN, INPUT_SIZE
    k = 1.0 / jnp.sqrt(jnp.float32(H))
    keys = jax.random.split(key, 10)
    u = lambda kk, shape: jax.random.uniform(kk, shape, jnp.float32, -k, k)
    return {
        "wih0": u(keys[0], (I, 4 * H)),
        "whh0": u(keys[1], (H, 4 * H)),
        "b0":   u(keys[2], (1, 4 * H)) + u(keys[3], (1, 4 * H)),
        "wih1": u(keys[4], (H, 4 * H)),
        "whh1": u(keys[5], (H, 4 * H)),
        "b1":   u(keys[6], (1, 4 * H)) + u(keys[7], (1, 4 * H)),
        "wfc":  u(keys[8], (H, FC_OUT)),
        "bfc":  u(keys[9], (1, FC_OUT)),
    }


# ----------------------------------- main -------------------------------------
if __name__ == "__main__":
    key = jax.random.PRNGKey(0)
    pkey, xkey = jax.random.split(key)
    params = init_params(pkey)
    x = jax.random.normal(xkey, (BATCH, SEQ, INPUT_SIZE), jnp.float32)

    ETC, y, (hn, cn) = tc_encoder_forward(x, params)
    jax.block_until_ready((ETC, y, hn, cn))

    assert ETC.shape == (BATCH, 1, HIDDEN)
    assert y.shape == (BATCH, SEQ, FC_OUT)
    assert hn.shape == (NUM_LAYERS, BATCH, HIDDEN)
    assert cn.shape == (NUM_LAYERS, BATCH, HIDDEN)

    # Matched-precision reference (bf16 MXU operands, f32 accumulation): tight.
    ETC_r, y_r, (hn_r, cn_r) = tc_encoder_ref(x, params, jnp.bfloat16)
    for a, b in ((ETC, ETC_r), (y, y_r), (hn, hn_r), (cn, cn_r)):
        assert jnp.allclose(a, b, rtol=2e-3, atol=2e-3), "mismatch vs bf16 reference"

    # Full-precision reference (PyTorch semantics): loose, bf16 MXU error budget.
    ETC_f, y_f, (hn_f, cn_f) = tc_encoder_ref(x, params, jnp.float32)
    for a, b in ((ETC, ETC_f), (y, y_f), (hn, hn_f), (cn, cn_f)):
        assert jnp.allclose(a, b, rtol=5e-2, atol=5e-2), "mismatch vs f32 reference"

    print("KERNEL_OK")
</pallas_src>

<mosaic_0001>
module attributes {stable_mosaic.version = 11 : i64} {
  func.func @tc_encoder_kernel(%arg0: memref<2x8x4xf32, #tpu.memory_space<vmem>>, %arg1: memref<4x128xbf16, #tpu.memory_space<vmem>>, %arg2: memref<32x128xbf16, #tpu.memory_space<vmem>>, %arg3: memref<1x128xf32, #tpu.memory_space<vmem>>, %arg4: memref<64x128xbf16, #tpu.memory_space<vmem>>, %arg5: memref<1x128xf32, #tpu.memory_space<vmem>>, %arg6: memref<32x2xf32, #tpu.memory_space<vmem>>, %arg7: memref<1x2xf32, #tpu.memory_space<vmem>>, %arg8: memref<2x32xf32, #tpu.memory_space<vmem>>, %arg9: memref<2x8x2xf32, #tpu.memory_space<vmem>>, %arg10: memref<2x2x32xf32, #tpu.memory_space<vmem>>, %arg11: memref<2x2x32xf32, #tpu.memory_space<vmem>>, %arg12: memref<2x8x32xf32, #tpu.memory_space<vmem>>) attributes {dimension_semantics = [], scalar_prefetch = 0 : i64, scratch_operands = 1 : i64, tpu.core_type = #tpu.core_type<tc>} {
    %c0 = arith.constant 0 : index
    %c0_0 = arith.constant 0 : index
    %0 = vector.load %arg2[%c0, %c0_0] : memref<32x128xbf16, #tpu.memory_space<vmem>>, vector<32x128xbf16>
    %c0_1 = arith.constant 0 : index
    %c0_2 = arith.constant 0 : index
    %1 = vector.load %arg4[%c0_1, %c0_2] : memref<64x128xbf16, #tpu.memory_space<vmem>>, vector<64x128xbf16>
    %c0_3 = arith.constant 0 : index
    %c0_4 = arith.constant 0 : index
    %2 = vector.load %arg3[%c0_3, %c0_4] : memref<1x128xf32, #tpu.memory_space<vmem>>, vector<1x128xf32>
    %c0_5 = arith.constant 0 : index
    %c0_6 = arith.constant 0 : index
    %3 = vector.load %arg5[%c0_5, %c0_6] : memref<1x128xf32, #tpu.memory_space<vmem>>, vector<1x128xf32>
    %c0_7 = arith.constant 0 : index
    %c0_8 = arith.constant 0 : index
    %c0_9 = arith.constant 0 : index
    %4 = vector.load %arg0[%c0_7, %c0_8, %c0_9] : memref<2x8x4xf32, #tpu.memory_space<vmem>>, vector<2x8x4xf32>
    %5 = arith.truncf %4 : vector<2x8x4xf32> to vector<2x8x4xbf16>
    %c0_10 = arith.constant 0 : index
    %c0_11 = arith.constant 0 : index
    %6 = vector.load %arg1[%c0_10, %c0_11] : memref<4x128xbf16, #tpu.memory_space<vmem>>, vector<4x128xbf16>
    %cst = arith.constant dense<0.000000e+00> : vector<2x8x128xf32>
    %7 = tpu.matmul %5, %6, %cst {dimension_numbers = #tpu.dot_dimension_numbers<[2], [0], [0, 1], [1], [0, 0, 0, 1, 1, 1], [], []>} : vector<2x8x4xbf16>, vector<4x128xbf16>, vector<2x8x128xf32> -> vector<2x8x128xf32>
    %cst_12 = arith.constant 0.000000e+00 : f32
    %8 = vector.broadcast %cst_12 : f32 to vector<2x32xf32>
    %9 = vector.extract_strided_slice %7 {offsets = [0, 0, 0], sizes = [2, 1, 128], strides = [1, 1, 1]} : vector<2x8x128xf32> to vector<2x1x128xf32>
    %10 = vector.shape_cast %9 : vector<2x1x128xf32> to vector<2x128xf32>
    %11 = arith.truncf %8 : vector<2x32xf32> to vector<2x32xbf16>
    %cst_13 = arith.constant dense<0.000000e+00> : vector<2x128xf32>
    %12 = tpu.matmul %11, %0, %cst_13 {dimension_numbers = #tpu.dot_dimension_numbers<[1], [0], [0], [1], [0, 0, 1, 1], [], []>} : vector<2x32xbf16>, vector<32x128xbf16>, vector<2x128xf32> -> vector<2x128xf32>
    %13 = arith.addf %10, %12 : vector<2x128xf32>
    %14 = vector.broadcast %2 : vector<1x128xf32> to vector<2x128xf32>
    %15 = arith.addf %13, %14 : vector<2x128xf32>
    %16 = arith.negf %15 : vector<2x128xf32>
    %17 = math.exp %16 : vector<2x128xf32>
    %cst_14 = arith.constant 1.000000e+00 : f32
    %18 = vector.broadcast %cst_14 : f32 to vector<2x128xf32>
    %19 = arith.addf %18, %17 : vector<2x128xf32>
    %20 = arith.divf %18, %19 : vector<2x128xf32>
    %21 = vector.extract_strided_slice %20 {offsets = [0, 0], sizes = [2, 32], strides = [1, 1]} : vector<2x128xf32> to vector<2x32xf32>
    %22 = vector.extract_strided_slice %20 {offsets = [0, 32], sizes = [2, 32], strides = [1, 1]} : vector<2x128xf32> to vector<2x32xf32>
    %23 = vector.extract_strided_slice %20 {offsets = [0, 96], sizes = [2, 32], strides = [1, 1]} : vector<2x128xf32> to vector<2x32xf32>
    %24 = vector.extract_strided_slice %15 {offsets = [0, 64], sizes = [2, 32], strides = [1, 1]} : vector<2x128xf32> to vector<2x32xf32>
    %25 = math.tanh %24 : vector<2x32xf32>
    %26 = arith.mulf %22, %8 : vector<2x32xf32>
    %27 = arith.mulf %21, %25 : vector<2x32xf32>
    %28 = arith.addf %26, %27 : vector<2x32xf32>
    %29 = math.tanh %28 : vector<2x32xf32>
    %30 = arith.mulf %23, %29 : vector<2x32xf32>
    %31 = tpu.concatenate %30, %8 in 1 : vector<2x32xf32>, vector<2x32xf32> -> vector<2x64xf32>
    %32 = arith.truncf %31 : vector<2x64xf32> to vector<2x64xbf16>
    %cst_15 = arith.constant dense<0.000000e+00> : vector<2x128xf32>
    %33 = tpu.matmul %32, %1, %cst_15 {dimension_numbers = #tpu.dot_dimension_numbers<[1], [0], [0], [1], [0, 0, 1, 1], [], []>} : vector<2x64xbf16>, vector<64x128xbf16>, vector<2x128xf32> -> vector<2x128xf32>
    %34 = vector.broadcast %3 : vector<1x128xf32> to vector<2x128xf32>
    %35 = arith.addf %33, %34 : vector<2x128xf32>
    %36 = arith.negf %35 : vector<2x128xf32>
    %37 = math.exp %36 : vector<2x128xf32>
    %cst_16 = arith.constant 1.000000e+00 : f32
    %38 = vector.broadcast %cst_16 : f32 to vector<2x128xf32>
    %39 = arith.addf %38, %37 : vector<2x128xf32>
    %40 = arith.divf %38, %39 : vector<2x128xf32>
    %41 = vector.extract_strided_slice %40 {offsets = [0, 0], sizes = [2, 32], strides = [1, 1]} : vector<2x128xf32> to vector<2x32xf32>
    %42 = vector.extract_strided_slice %40 {offsets = [0, 32], sizes = [2, 32], strides = [1, 1]} : vector<2x128xf32> to vector<2x32xf32>
    %43 = vector.extract_strided_slice %40 {offsets = [0, 96], sizes = [2, 32], strides = [1, 1]} : vector<2x128xf32> to vector<2x32xf32>
    %44 = vector.extract_strided_slice %35 {offsets = [0, 64], sizes = [2, 32], strides = [1, 1]} : vector<2x128xf32> to vector<2x32xf32>
    %45 = math.tanh %44 : vector<2x32xf32>
    %46 = arith.mulf %42, %8 : vector<2x32xf32>
    %47 = arith.mulf %41, %45 : vector<2x32xf32>
    %48 = arith.addf %46, %47 : vector<2x32xf32>
    %49 = math.tanh %48 : vector<2x32xf32>
    %50 = arith.mulf %43, %49 : vector<2x32xf32>
    %c0_17 = arith.constant 0 : index
    %c0_18 = arith.constant 0 : index
    %c0_19 = arith.constant 0 : index
    %51 = vector.load %arg12[%c0_17, %c0_18, %c0_19] : memref<2x8x32xf32, #tpu.memory_space<vmem>>, vector<2x1x32xf32>
    %52 = vector.shape_cast %51 : vector<2x1x32xf32> to vector<2x32xf32>
    %53 = vector.shape_cast %50 : vector<2x32xf32> to vector<2x1x32xf32>
    tpu.vector_store %arg12[%c0_17, %c0_18, %c0_19], %53 {strides = array<i32>} : memref<2x8x32xf32, #tpu.memory_space<vmem>>, vector<2x1x32xf32>,
    %54 = arith.addf %8, %50 : vector<2x32xf32>
    %55 = vector.extract_strided_slice %7 {offsets = [0, 1, 0], sizes = [2, 1, 128], strides = [1, 1, 1]} : vector<2x8x128xf32> to vector<2x1x128xf32>
    %56 = vector.shape_cast %55 : vector<2x1x128xf32> to vector<2x128xf32>
    %57 = arith.truncf %30 : vector<2x32xf32> to vector<2x32xbf16>
    %cst_20 = arith.constant dense<0.000000e+00> : vector<2x128xf32>
    %58 = tpu.matmul %57, %0, %cst_20 {dimension_numbers = #tpu.dot_dimension_numbers<[1], [0], [0], [1], [0, 0, 1, 1], [], []>} : vector<2x32xbf16>, vector<32x128xbf16>, vector<2x128xf32> -> vector<2x128xf32>
    %59 = arith.addf %56, %58 : vector<2x128xf32>
    %60 = vector.broadcast %2 : vector<1x128xf32> to vector<2x128xf32>
    %61 = arith.addf %59, %60 : vector<2x128xf32>
    %62 = arith.negf %61 : vector<2x128xf32>
    %63 = math.exp %62 : vector<2x128xf32>
    %cst_21 = arith.constant 1.000000e+00 : f32
    %64 = vector.broadcast %cst_21 : f32 to vector<2x128xf32>
    %65 = arith.addf %64, %63 : vector<2x128xf32>
    %66 = arith.divf %64, %65 : vector<2x128xf32>
    %67 = vector.extract_strided_slice %66 {offsets = [0, 0], sizes = [2, 32], strides = [1, 1]} : vector<2x128xf32> to vector<2x32xf32>
    %68 = vector.extract_strided_slice %66 {offsets = [0, 32], sizes = [2, 32], strides = [1, 1]} : vector<2x128xf32> to vector<2x32xf32>
    %69 = vector.extract_strided_slice %66 {offsets = [0, 96], sizes = [2, 32], strides = [1, 1]} : vector<2x128xf32> to vector<2x32xf32>
    %70 = vector.extract_strided_slice %61 {offsets = [0, 64], sizes = [2, 32], strides = [1, 1]} : vector<2x128xf32> to vector<2x32xf32>
    %71 = math.tanh %70 : vector<2x32xf32>
    %72 = arith.mulf %68, %28 : vector<2x32xf32>
    %73 = arith.mulf %67, %71 : vector<2x32xf32>
    %74 = arith.addf %72, %73 : vector<2x32xf32>
    %75 = math.tanh %74 : vector<2x32xf32>
    %76 = arith.mulf %69, %75 : vector<2x32xf32>
    %77 = tpu.concatenate %76, %50 in 1 : vector<2x32xf32>, vector<2x32xf32> -> vector<2x64xf32>
    %78 = arith.truncf %77 : vector<2x64xf32> to vector<2x64xbf16>
    %cst_22 = arith.constant dense<0.000000e+00> : vector<2x128xf32>
    %79 = tpu.matmul %78, %1, %cst_22 {dimension_numbers = #tpu.dot_dimension_numbers<[1], [0], [0], [1], [0, 0, 1, 1], [], []>} : vector<2x64xbf16>, vector<64x128xbf16>, vector<2x128xf32> -> vector<2x128xf32>
    %80 = vector.broadcast %3 : vector<1x128xf32> to vector<2x128xf32>
    %81 = arith.addf %79, %80 : vector<2x128xf32>
    %82 = arith.negf %81 : vector<2x128xf32>
    %83 = math.exp %82 : vector<2x128xf32>
    %cst_23 = arith.constant 1.000000e+00 : f32
    %84 = vector.broadcast %cst_23 : f32 to vector<2x128xf32>
    %85 = arith.addf %84, %83 : vector<2x128xf32>
    %86 = arith.divf %84, %85 : vector<2x128xf32>
    %87 = vector.extract_strided_slice %86 {offsets = [0, 0], sizes = [2, 32], strides = [1, 1]} : vector<2x128xf32> to vector<2x32xf32>
    %88 = vector.extract_strided_slice %86 {offsets = [0, 32], sizes = [2, 32], strides = [1, 1]} : vector<2x128xf32> to vector<2x32xf32>
    %89 = vector.extract_strided_slice %86 {offsets = [0, 96], sizes = [2, 32], strides = [1, 1]} : vector<2x128xf32> to vector<2x32xf32>
    %90 = vector.extract_strided_slice %81 {offsets = [0, 64], sizes = [2, 32], strides = [1, 1]} : vector<2x128xf32> to vector<2x32xf32>
    %91 = math.tanh %90 : vector<2x32xf32>
    %92 = arith.mulf %88, %48 : vector<2x32xf32>
    %93 = arith.mulf %87, %91 : vector<2x32xf32>
    %94 = arith.addf %92, %93 : vector<2x32xf32>
    %95 = math.tanh %94 : vector<2x32xf32>
    %96 = arith.mulf %89, %95 : vector<2x32xf32>
    %c0_24 = arith.constant 0 : index
    %c1 = arith.constant 1 : index
    %c0_25 = arith.constant 0 : index
    %97 = vector.load %arg12[%c0_24, %c1, %c0_25] : memref<2x8x32xf32, #tpu.memory_space<vmem>>, vector<2x1x32xf32>
    %98 = vector.shape_cast %97 : vector<2x1x32xf32> to vector<2x32xf32>
    %99 = vector.shape_cast %96 : vector<2x32xf32> to vector<2x1x32xf32>
    tpu.vector_store %arg12[%c0_24, %c1, %c0_25], %99 {strides = array<i32>} : memref<2x8x32xf32, #tpu.memory_space<vmem>>, vector<2x1x32xf32>,
    %100 = arith.addf %54, %96 : vector<2x32xf32>
    %101 = vector.extract_strided_slice %7 {offsets = [0, 2, 0], sizes = [2, 1, 128], strides = [1, 1, 1]} : vector<2x8x128xf32> to vector<2x1x128xf32>
    %102 = vector.shape_cast %101 : vector<2x1x128xf32> to vector<2x128xf32>
    %103 = arith.truncf %76 : vector<2x32xf32> to vector<2x32xbf16>
    %cst_26 = arith.constant dense<0.000000e+00> : vector<2x128xf32>
    %104 = tpu.matmul %103, %0, %cst_26 {dimension_numbers = #tpu.dot_dimension_numbers<[1], [0], [0], [1], [0, 0, 1, 1], [], []>} : vector<2x32xbf16>, vector<32x128xbf16>, vector<2x128xf32> -> vector<2x128xf32>
    %105 = arith.addf %102, %104 : vector<2x128xf32>
    %106 = vector.broadcast %2 : vector<1x128xf32> to vector<2x128xf32>
    %107 = arith.addf %105, %106 : vector<2x128xf32>
    %108 = arith.negf %107 : vector<2x128xf32>
    %109 = math.exp %108 : vector<2x128xf32>
    %cst_27 = arith.constant 1.000000e+00 : f32
    %110 = vector.broadcast %cst_27 : f32 to vector<2x128xf32>
    %111 = arith.addf %110, %109 : vector<2x128xf32>
    %112 = arith.divf %110, %111 : vector<2x128xf32>
    %113 = vector.extract_strided_slice %112 {offsets = [0, 0], sizes = [2, 32], strides = [1, 1]} : vector<2x128xf32> to vector<2x32xf32>
    %114 = vector.extract_strided_slice %112 {offsets = [0, 32], sizes = [2, 32], strides = [1, 1]} : vector<2x128xf32> to vector<2x32xf32>
    %115 = vector.extract_strided_slice %112 {offsets = [0, 96], sizes = [2, 32], strides = [1, 1]} : vector<2x128xf32> to vector<2x32xf32>
    %116 = vector.extract_strided_slice %107 {offsets = [0, 64], sizes = [2, 32], strides = [1, 1]} : vector<2x128xf32> to vector<2x32xf32>
    %117 = math.tanh %116 : vector<2x32xf32>
    %118 = arith.mulf %114, %74 : vector<2x32xf32>
    %119 = arith.mulf %113, %117 : vector<2x32xf32>
    %120 = arith.addf %118, %119 : vector<2x32xf32>
    %121 = math.tanh %120 : vector<2x32xf32>
    %122 = arith.mulf %115, %121 : vector<2x32xf32>
    %123 = tpu.concatenate %122, %96 in 1 : vector<2x32xf32>, vector<2x32xf32> -> vector<2x64xf32>
    %124 = arith.truncf %123 : vector<2x64xf32> to vector<2x64xbf16>
    %cst_28 = arith.constant dense<0.000000e+00> : vector<2x128xf32>
    %125 = tpu.matmul %124, %1, %cst_28 {dimension_numbers = #tpu.dot_dimension_numbers<[1], [0], [0], [1], [0, 0, 1, 1], [], []>} : vector<2x64xbf16>, vector<64x128xbf16>, vector<2x128xf32> -> vector<2x128xf32>
    %126 = vector.broadcast %3 : vector<1x128xf32> to vector<2x128xf32>
    %127 = arith.addf %125, %126 : vector<2x128xf32>
    %128 = arith.negf %127 : vector<2x128xf32>
    %129 = math.exp %128 : vector<2x128xf32>
    %cst_29 = arith.constant 1.000000e+00 : f32
    %130 = vector.broadcast %cst_29 : f32 to vector<2x128xf32>
    %131 = arith.addf %130, %129 : vector<2x128xf32>
    %132 = arith.divf %130, %131 : vector<2x128xf32>
    %133 = vector.extract_strided_slice %132 {offsets = [0, 0], sizes = [2, 32], strides = [1, 1]} : vector<2x128xf32> to vector<2x32xf32>
    %134 = vector.extract_strided_slice %132 {offsets = [0, 32], sizes = [2, 32], strides = [1, 1]} : vector<2x128xf32> to vector<2x32xf32>
    %135 = vector.extract_strided_slice %132 {offsets = [0, 96], sizes = [2, 32], strides = [1, 1]} : vector<2x128xf32> to vector<2x32xf32>
    %136 = vector.extract_strided_slice %127 {offsets = [0, 64], sizes = [2, 32], strides = [1, 1]} : vector<2x128xf32> to vector<2x32xf32>
    %137 = math.tanh %136 : vector<2x32xf32>
    %138 = arith.mulf %134, %94 : vector<2x32xf32>
    %139 = arith.mulf %133, %137 : vector<2x32xf32>
    %140 = arith.addf %138, %139 : vector<2x32xf32>
    %141 = math.tanh %140 : vector<2x32xf32>
    %142 = arith.mulf %135, %141 : vector<2x32xf32>
    %c0_30 = arith.constant 0 : index
    %c2 = arith.constant 2 : index
    %c0_31 = arith.constant 0 : index
    %143 = vector.load %arg12[%c0_30, %c2, %c0_31] : memref<2x8x32xf32, #tpu.memory_space<vmem>>, vector<2x1x32xf32>
    %144 = vector.shape_cast %143 : vector<2x1x32xf32> to vector<2x32xf32>
    %145 = vector.shape_cast %142 : vector<2x32xf32> to vector<2x1x32xf32>
    tpu.vector_store %arg12[%c0_30, %c2, %c0_31], %145 {strides = array<i32>} : memref<2x8x32xf32, #tpu.memory_space<vmem>>, vector<2x1x32xf32>,
    %146 = arith.addf %100, %142 : vector<2x32xf32>
    %147 = vector.extract_strided_slice %7 {offsets = [0, 3, 0], sizes = [2, 1, 128], strides = [1, 1, 1]} : vector<2x8x128xf32> to vector<2x1x128xf32>
    %148 = vector.shape_cast %147 : vector<2x1x128xf32> to vector<2x128xf32>
    %149 = arith.truncf %122 : vector<2x32xf32> to vector<2x32xbf16>
    %cst_32 = arith.constant dense<0.000000e+00> : vector<2x128xf32>
    %150 = tpu.matmul %149, %0, %cst_32 {dimension_numbers = #tpu.dot_dimension_numbers<[1], [0], [0], [1], [0, 0, 1, 1], [], []>} : vector<2x32xbf16>, vector<32x128xbf16>, vector<2x128xf32> -> vector<2x128xf32>
    %151 = arith.addf %148, %150 : vector<2x128xf32>
    %152 = vector.broadcast %2 : vector<1x128xf32> to vector<2x128xf32>
    %153 = arith.addf %151, %152 : vector<2x128xf32>
    %154 = arith.negf %153 : vector<2x128xf32>
    %155 = math.exp %154 : vector<2x128xf32>
    %cst_33 = arith.constant 1.000000e+00 : f32
    %156 = vector.broadcast %cst_33 : f32 to vector<2x128xf32>
    %157 = arith.addf %156, %155 : vector<2x128xf32>
    %158 = arith.divf %156, %157 : vector<2x128xf32>
    %159 = vector.extract_strided_slice %158 {offsets = [0, 0], sizes = [2, 32], strides = [1, 1]} : vector<2x128xf32> to vector<2x32xf32>
    %160 = vector.extract_strided_slice %158 {offsets = [0, 32], sizes = [2, 32], strides = [1, 1]} : vector<2x128xf32> to vector<2x32xf32>
    %161 = vector.extract_strided_slice %158 {offsets = [0, 96], sizes = [2, 32], strides = [1, 1]} : vector<2x128xf32> to vector<2x32xf32>
    %162 = vector.extract_strided_slice %153 {offsets = [0, 64], sizes = [2, 32], strides = [1, 1]} : vector<2x128xf32> to vector<2x32xf32>
    %163 = math.tanh %162 : vector<2x32xf32>
    %164 = arith.mulf %160, %120 : vector<2x32xf32>
    %165 = arith.mulf %159, %163 : vector<2x32xf32>
    %166 = arith.addf %164, %165 : vector<2x32xf32>
    %167 = math.tanh %166 : vector<2x32xf32>
    %168 = arith.mulf %161, %167 : vector<2x32xf32>
    %169 = tpu.concatenate %168, %142 in 1 : vector<2x32xf32>, vector<2x32xf32> -> vector<2x64xf32>
    %170 = arith.truncf %169 : vector<2x64xf32> to vector<2x64xbf16>
    %cst_34 = arith.constant dense<0.000000e+00> : vector<2x128xf32>
    %171 = tpu.matmul %170, %1, %cst_34 {dimension_numbers = #tpu.dot_dimension_numbers<[1], [0], [0], [1], [0, 0, 1, 1], [], []>} : vector<2x64xbf16>, vector<64x128xbf16>, vector<2x128xf32> -> vector<2x128xf32>
    %172 = vector.broadcast %3 : vector<1x128xf32> to vector<2x128xf32>
    %173 = arith.addf %171, %172 : vector<2x128xf32>
    %174 = arith.negf %173 : vector<2x128xf32>
    %175 = math.exp %174 : vector<2x128xf32>
    %cst_35 = arith.constant 1.000000e+00 : f32
    %176 = vector.broadcast %cst_35 : f32 to vector<2x128xf32>
    %177 = arith.addf %176, %175 : vector<2x128xf32>
    %178 = arith.divf %176, %177 : vector<2x128xf32>
    %179 = vector.extract_strided_slice %178 {offsets = [0, 0], sizes = [2, 32], strides = [1, 1]} : vector<2x128xf32> to vector<2x32xf32>
    %180 = vector.extract_strided_slice %178 {offsets = [0, 32], sizes = [2, 32], strides = [1, 1]} : vector<2x128xf32> to vector<2x32xf32>
    %181 = vector.extract_strided_slice %178 {offsets = [0, 96], sizes = [2, 32], strides = [1, 1]} : vector<2x128xf32> to vector<2x32xf32>
    %182 = vector.extract_strided_slice %173 {offsets = [0, 64], sizes = [2, 32], strides = [1, 1]} : vector<2x128xf32> to vector<2x32xf32>
    %183 = math.tanh %182 : vector<2x32xf32>
    %184 = arith.mulf %180, %140 : vector<2x32xf32>
    %185 = arith.mulf %179, %183 : vector<2x32xf32>
    %186 = arith.addf %184, %185 : vector<2x32xf32>
    %187 = math.tanh %186 : vector<2x32xf32>
    %188 = arith.mulf %181, %187 : vector<2x32xf32>
    %c0_36 = arith.constant 0 : index
    %c3 = arith.constant 3 : index
    %c0_37 = arith.constant 0 : index
    %189 = vector.load %arg12[%c0_36, %c3, %c0_37] : memref<2x8x32xf32, #tpu.memory_space<vmem>>, vector<2x1x32xf32>
    %190 = vector.shape_cast %189 : vector<2x1x32xf32> to vector<2x32xf32>
    %191 = vector.shape_cast %188 : vector<2x32xf32> to vector<2x1x32xf32>
    tpu.vector_store %arg12[%c0_36, %c3, %c0_37], %191 {strides = array<i32>} : memref<2x8x32xf32, #tpu.memory_space<vmem>>, vector<2x1x32xf32>,
    %192 = arith.addf %146, %188 : vector<2x32xf32>
    %193 = vector.extract_strided_slice %7 {offsets = [0, 4, 0], sizes = [2, 1, 128], strides = [1, 1, 1]} : vector<2x8x128xf32> to vector<2x1x128xf32>
    %194 = vector.shape_cast %193 : vector<2x1x128xf32> to vector<2x128xf32>
    %195 = arith.truncf %168 : vector<2x32xf32> to vector<2x32xbf16>
    %cst_38 = arith.constant dense<0.000000e+00> : vector<2x128xf32>
    %196 = tpu.matmul %195, %0, %cst_38 {dimension_numbers = #tpu.dot_dimension_numbers<[1], [0], [0], [1], [0, 0, 1, 1], [], []>} : vector<2x32xbf16>, vector<32x128xbf16>, vector<2x128xf32> -> vector<2x128xf32>
    %197 = arith.addf %194, %196 : vector<2x128xf32>
    %198 = vector.broadcast %2 : vector<1x128xf32> to vector<2x128xf32>
    %199 = arith.addf %197, %198 : vector<2x128xf32>
    %200 = arith.negf %199 : vector<2x128xf32>
    %201 = math.exp %200 : vector<2x128xf32>
    %cst_39 = arith.constant 1.000000e+00 : f32
    %202 = vector.broadcast %cst_39 : f32 to vector<2x128xf32>
    %203 = arith.addf %202, %201 : vector<2x128xf32>
    %204 = arith.divf %202, %203 : vector<2x128xf32>
    %205 = vector.extract_strided_slice %204 {offsets = [0, 0], sizes = [2, 32], strides = [1, 1]} : vector<2x128xf32> to vector<2x32xf32>
    %206 = vector.extract_strided_slice %204 {offsets = [0, 32], sizes = [2, 32], strides = [1, 1]} : vector<2x128xf32> to vector<2x32xf32>
    %207 = vector.extract_strided_slice %204 {offsets = [0, 96], sizes = [2, 32], strides = [1, 1]} : vector<2x128xf32> to vector<2x32xf32>
    %208 = vector.extract_strided_slice %199 {offsets = [0, 64], sizes = [2, 32], strides = [1, 1]} : vector<2x128xf32> to vector<2x32xf32>
    %209 = math.tanh %208 : vector<2x32xf32>
    %210 = arith.mulf %206, %166 : vector<2x32xf32>
    %211 = arith.mulf %205, %209 : vector<2x32xf32>
    %212 = arith.addf %210, %211 : vector<2x32xf32>
    %213 = math.tanh %212 : vector<2x32xf32>
    %214 = arith.mulf %207, %213 : vector<2x32xf32>
    %215 = tpu.concatenate %214, %188 in 1 : vector<2x32xf32>, vector<2x32xf32> -> vector<2x64xf32>
    %216 = arith.truncf %215 : vector<2x64xf32> to vector<2x64xbf16>
    %cst_40 = arith.constant dense<0.000000e+00> : vector<2x128xf32>
    %217 = tpu.matmul %216, %1, %cst_40 {dimension_numbers = #tpu.dot_dimension_numbers<[1], [0], [0], [1], [0, 0, 1, 1], [], []>} : vector<2x64xbf16>, vector<64x128xbf16>, vector<2x128xf32> -> vector<2x128xf32>
    %218 = vector.broadcast %3 : vector<1x128xf32> to vector<2x128xf32>
    %219 = arith.addf %217, %218 : vector<2x128xf32>
    %220 = arith.negf %219 : vector<2x128xf32>
    %221 = math.exp %220 : vector<2x128xf32>
    %cst_41 = arith.constant 1.000000e+00 : f32
    %222 = vector.broadcast %cst_41 : f32 to vector<2x128xf32>
    %223 = arith.addf %222, %221 : vector<2x128xf32>
    %224 = arith.divf %222, %223 : vector<2x128xf32>
    %225 = vector.extract_strided_slice %224 {offsets = [0, 0], sizes = [2, 32], strides = [1, 1]} : vector<2x128xf32> to vector<2x32xf32>
    %226 = vector.extract_strided_slice %224 {offsets = [0, 32], sizes = [2, 32], strides = [1, 1]} : vector<2x128xf32> to vector<2x32xf32>
    %227 = vector.extract_strided_slice %224 {offsets = [0, 96], sizes = [2, 32], strides = [1, 1]} : vector<2x128xf32> to vector<2x32xf32>
    %228 = vector.extract_strided_slice %219 {offsets = [0, 64], sizes = [2, 32], strides = [1, 1]} : vector<2x128xf32> to vector<2x32xf32>
    %229 = math.tanh %228 : vector<2x32xf32>
    %230 = arith.mulf %226, %186 : vector<2x32xf32>
    %231 = arith.mulf %225, %229 : vector<2x32xf32>
    %232 = arith.addf %230, %231 : vector<2x32xf32>
    %233 = math.tanh %232 : vector<2x32xf32>
    %234 = arith.mulf %227, %233 : vector<2x32xf32>
    %c0_42 = arith.constant 0 : index
    %c4 = arith.constant 4 : index
    %c0_43 = arith.constant 0 : index
    %235 = vector.load %arg12[%c0_42, %c4, %c0_43] : memref<2x8x32xf32, #tpu.memory_space<vmem>>, vector<2x1x32xf32>
    %236 = vector.shape_cast %235 : vector<2x1x32xf32> to vector<2x32xf32>
    %237 = vector.shape_cast %234 : vector<2x32xf32> to vector<2x1x32xf32>
    tpu.vector_store %arg12[%c0_42, %c4, %c0_43], %237 {strides = array<i32>} : memref<2x8x32xf32, #tpu.memory_space<vmem>>, vector<2x1x32xf32>,
    %238 = arith.addf %192, %234 : vector<2x32xf32>
    %239 = vector.extract_strided_slice %7 {offsets = [0, 5, 0], sizes = [2, 1, 128], strides = [1, 1, 1]} : vector<2x8x128xf32> to vector<2x1x128xf32>
    %240 = vector.shape_cast %239 : vector<2x1x128xf32> to vector<2x128xf32>
    %241 = arith.truncf %214 : vector<2x32xf32> to vector<2x32xbf16>
    %cst_44 = arith.constant dense<0.000000e+00> : vector<2x128xf32>
    %242 = tpu.matmul %241, %0, %cst_44 {dimension_numbers = #tpu.dot_dimension_numbers<[1], [0], [0], [1], [0, 0, 1, 1], [], []>} : vector<2x32xbf16>, vector<32x128xbf16>, vector<2x128xf32> -> vector<2x128xf32>
    %243 = arith.addf %240, %242 : vector<2x128xf32>
    %244 = vector.broadcast %2 : vector<1x128xf32> to vector<2x128xf32>
    %245 = arith.addf %243, %244 : vector<2x128xf32>
    %246 = arith.negf %245 : vector<2x128xf32>
    %247 = math.exp %246 : vector<2x128xf32>
    %cst_45 = arith.constant 1.000000e+00 : f32
    %248 = vector.broadcast %cst_45 : f32 to vector<2x128xf32>
    %249 = arith.addf %248, %247 : vector<2x128xf32>
    %250 = arith.divf %248, %249 : vector<2x128xf32>
    %251 = vector.extract_strided_slice %250 {offsets = [0, 0], sizes = [2, 32], strides = [1, 1]} : vector<2x128xf32> to vector<2x32xf32>
    %252 = vector.extract_strided_slice %250 {offsets = [0, 32], sizes = [2, 32], strides = [1, 1]} : vector<2x128xf32> to vector<2x32xf32>
    %253 = vector.extract_strided_slice %250 {offsets = [0, 96], sizes = [2, 32], strides = [1, 1]} : vector<2x128xf32> to vector<2x32xf32>
    %254 = vector.extract_strided_slice %245 {offsets = [0, 64], sizes = [2, 32], strides = [1, 1]} : vector<2x128xf32> to vector<2x32xf32>
    %255 = math.tanh %254 : vector<2x32xf32>
    %256 = arith.mulf %252, %212 : vector<2x32xf32>
    %257 = arith.mulf %251, %255 : vector<2x32xf32>
    %258 = arith.addf %256, %257 : vector<2x32xf32>
    %259 = math.tanh %258 : vector<2x32xf32>
    %260 = arith.mulf %253, %259 : vector<2x32xf32>
    %261 = tpu.concatenate %260, %234 in 1 : vector<2x32xf32>, vector<2x32xf32> -> vector<2x64xf32>
    %262 = arith.truncf %261 : vector<2x64xf32> to vector<2x64xbf16>
    %cst_46 = arith.constant dense<0.000000e+00> : vector<2x128xf32>
    %263 = tpu.matmul %262, %1, %cst_46 {dimension_numbers = #tpu.dot_dimension_numbers<[1], [0], [0], [1], [0, 0, 1, 1], [], []>} : vector<2x64xbf16>, vector<64x128xbf16>, vector<2x128xf32> -> vector<2x128xf32>
    %264 = vector.broadcast %3 : vector<1x128xf32> to vector<2x128xf32>
    %265 = arith.addf %263, %264 : vector<2x128xf32>
    %266 = arith.negf %265 : vector<2x128xf32>
    %267 = math.exp %266 : vector<2x128xf32>
    %cst_47 = arith.constant 1.000000e+00 : f32
    %268 = vector.broadcast %cst_47 : f32 to vector<2x128xf32>
    %269 = arith.addf %268, %267 : vector<2x128xf32>
    %270 = arith.divf %268, %269 : vector<2x128xf32>
    %271 = vector.extract_strided_slice %270 {offsets = [0, 0], sizes = [2, 32], strides = [1, 1]} : vector<2x128xf32> to vector<2x32xf32>
    %272 = vector.extract_strided_slice %270 {offsets = [0, 32], sizes = [2, 32], strides = [1, 1]} : vector<2x128xf32> to vector<2x32xf32>
    %273 = vector.extract_strided_slice %270 {offsets = [0, 96], sizes = [2, 32], strides = [1, 1]} : vector<2x128xf32> to vector<2x32xf32>
    %274 = vector.extract_strided_slice %265 {offsets = [0, 64], sizes = [2, 32], strides = [1, 1]} : vector<2x128xf32> to vector<2x32xf32>
    %275 = math.tanh %274 : vector<2x32xf32>
    %276 = arith.mulf %272, %232 : vector<2x32xf32>
    %277 = arith.mulf %271, %275 : vector<2x32xf32>
    %278 = arith.addf %276, %277 : vector<2x32xf32>
    %279 = math.tanh %278 : vector<2x32xf32>
    %280 = arith.mulf %273, %279 : vector<2x32xf32>
    %c0_48 = arith.constant 0 : index
    %c5 = arith.constant 5 : index
    %c0_49 = arith.constant 0 : index
    %281 = vector.load %arg12[%c0_48, %c5, %c0_49] : memref<2x8x32xf32, #tpu.memory_space<vmem>>, vector<2x1x32xf32>
    %282 = vector.shape_cast %281 : vector<2x1x32xf32> to vector<2x32xf32>
    %283 = vector.shape_cast %280 : vector<2x32xf32> to vector<2x1x32xf32>
    tpu.vector_store %arg12[%c0_48, %c5, %c0_49], %283 {strides = array<i32>} : memref<2x8x32xf32, #tpu.memory_space<vmem>>, vector<2x1x32xf32>,
    %284 = arith.addf %238, %280 : vector<2x32xf32>
    %285 = vector.extract_strided_slice %7 {offsets = [0, 6, 0], sizes = [2, 1, 128], strides = [1, 1, 1]} : vector<2x8x128xf32> to vector<2x1x128xf32>
    %286 = vector.shape_cast %285 : vector<2x1x128xf32> to vector<2x128xf32>
    %287 = arith.truncf %260 : vector<2x32xf32> to vector<2x32xbf16>
    %cst_50 = arith.constant dense<0.000000e+00> : vector<2x128xf32>
    %288 = tpu.matmul %287, %0, %cst_50 {dimension_numbers = #tpu.dot_dimension_numbers<[1], [0], [0], [1], [0, 0, 1, 1], [], []>} : vector<2x32xbf16>, vector<32x128xbf16>, vector<2x128xf32> -> vector<2x128xf32>
    %289 = arith.addf %286, %288 : vector<2x128xf32>
    %290 = vector.broadcast %2 : vector<1x128xf32> to vector<2x128xf32>
    %291 = arith.addf %289, %290 : vector<2x128xf32>
    %292 = arith.negf %291 : vector<2x128xf32>
    %293 = math.exp %292 : vector<2x128xf32>
    %cst_51 = arith.constant 1.000000e+00 : f32
    %294 = vector.broadcast %cst_51 : f32 to vector<2x128xf32>
    %295 = arith.addf %294, %293 : vector<2x128xf32>
    %296 = arith.divf %294, %295 : vector<2x128xf32>
    %297 = vector.extract_strided_slice %296 {offsets = [0, 0], sizes = [2, 32], strides = [1, 1]} : vector<2x128xf32> to vector<2x32xf32>
    %298 = vector.extract_strided_slice %296 {offsets = [0, 32], sizes = [2, 32], strides = [1, 1]} : vector<2x128xf32> to vector<2x32xf32>
    %299 = vector.extract_strided_slice %296 {offsets = [0, 96], sizes = [2, 32], strides = [1, 1]} : vector<2x128xf32> to vector<2x32xf32>
    %300 = vector.extract_strided_slice %291 {offsets = [0, 64], sizes = [2, 32], strides = [1, 1]} : vector<2x128xf32> to vector<2x32xf32>
    %301 = math.tanh %300 : vector<2x32xf32>
    %302 = arith.mulf %298, %258 : vector<2x32xf32>
    %303 = arith.mulf %297, %301 : vector<2x32xf32>
    %304 = arith.addf %302, %303 : vector<2x32xf32>
    %305 = math.tanh %304 : vector<2x32xf32>
    %306 = arith.mulf %299, %305 : vector<2x32xf32>
    %307 = tpu.concatenate %306, %280 in 1 : vector<2x32xf32>, vector<2x32xf32> -> vector<2x64xf32>
    %308 = arith.truncf %307 : vector<2x64xf32> to vector<2x64xbf16>
    %cst_52 = arith.constant dense<0.000000e+00> : vector<2x128xf32>
    %309 = tpu.matmul %308, %1, %cst_52 {dimension_numbers = #tpu.dot_dimension_numbers<[1], [0], [0], [1], [0, 0, 1, 1], [], []>} : vector<2x64xbf16>, vector<64x128xbf16>, vector<2x128xf32> -> vector<2x128xf32>
    %310 = vector.broadcast %3 : vector<1x128xf32> to vector<2x128xf32>
    %311 = arith.addf %309, %310 : vector<2x128xf32>
    %312 = arith.negf %311 : vector<2x128xf32>
    %313 = math.exp %312 : vector<2x128xf32>
    %cst_53 = arith.constant 1.000000e+00 : f32
    %314 = vector.broadcast %cst_53 : f32 to vector<2x128xf32>
    %315 = arith.addf %314, %313 : vector<2x128xf32>
    %316 = arith.divf %314, %315 : vector<2x128xf32>
    %317 = vector.extract_strided_slice %316 {offsets = [0, 0], sizes = [2, 32], strides = [1, 1]} : vector<2x128xf32> to vector<2x32xf32>
    %318 = vector.extract_strided_slice %316 {offsets = [0, 32], sizes = [2, 32], strides = [1, 1]} : vector<2x128xf32> to vector<2x32xf32>
    %319 = vector.extract_strided_slice %316 {offsets = [0, 96], sizes = [2, 32], strides = [1, 1]} : vector<2x128xf32> to vector<2x32xf32>
    %320 = vector.extract_strided_slice %311 {offsets = [0, 64], sizes = [2, 32], strides = [1, 1]} : vector<2x128xf32> to vector<2x32xf32>
    %321 = math.tanh %320 : vector<2x32xf32>
    %322 = arith.mulf %318, %278 : vector<2x32xf32>
    %323 = arith.mulf %317, %321 : vector<2x32xf32>
    %324 = arith.addf %322, %323 : vector<2x32xf32>
    %325 = math.tanh %324 : vector<2x32xf32>
    %326 = arith.mulf %319, %325 : vector<2x32xf32>
    %c0_54 = arith.constant 0 : index
    %c6 = arith.constant 6 : index
    %c0_55 = arith.constant 0 : index
    %327 = vector.load %arg12[%c0_54, %c6, %c0_55] : memref<2x8x32xf32, #tpu.memory_space<vmem>>, vector<2x1x32xf32>
    %328 = vector.shape_cast %327 : vector<2x1x32xf32> to vector<2x32xf32>
    %329 = vector.shape_cast %326 : vector<2x32xf32> to vector<2x1x32xf32>
    tpu.vector_store %arg12[%c0_54, %c6, %c0_55], %329 {strides = array<i32>} : memref<2x8x32xf32, #tpu.memory_space<vmem>>, vector<2x1x32xf32>,
    %330 = arith.addf %284, %326 : vector<2x32xf32>
    %331 = vector.extract_strided_slice %7 {offsets = [0, 7, 0], sizes = [2, 1, 128], strides = [1, 1, 1]} : vector<2x8x128xf32> to vector<2x1x128xf32>
    %332 = vector.shape_cast %331 : vector<2x1x128xf32> to vector<2x128xf32>
    %333 = arith.truncf %306 : vector<2x32xf32> to vector<2x32xbf16>
    %cst_56 = arith.constant dense<0.000000e+00> : vector<2x128xf32>
    %334 = tpu.matmul %333, %0, %cst_56 {dimension_numbers = #tpu.dot_dimension_numbers<[1], [0], [0], [1], [0, 0, 1, 1], [], []>} : vector<2x32xbf16>, vector<32x128xbf16>, vector<2x128xf32> -> vector<2x128xf32>
    %335 = arith.addf %332, %334 : vector<2x128xf32>
    %336 = vector.broadcast %2 : vector<1x128xf32> to vector<2x128xf32>
    %337 = arith.addf %335, %336 : vector<2x128xf32>
    %338 = arith.negf %337 : vector<2x128xf32>
    %339 = math.exp %338 : vector<2x128xf32>
    %cst_57 = arith.constant 1.000000e+00 : f32
    %340 = vector.broadcast %cst_57 : f32 to vector<2x128xf32>
    %341 = arith.addf %340, %339 : vector<2x128xf32>
    %342 = arith.divf %340, %341 : vector<2x128xf32>
    %343 = vector.extract_strided_slice %342 {offsets = [0, 0], sizes = [2, 32], strides = [1, 1]} : vector<2x128xf32> to vector<2x32xf32>
    %344 = vector.extract_strided_slice %342 {offsets = [0, 32], sizes = [2, 32], strides = [1, 1]} : vector<2x128xf32> to vector<2x32xf32>
    %345 = vector.extract_strided_slice %342 {offsets = [0, 96], sizes = [2, 32], strides = [1, 1]} : vector<2x128xf32> to vector<2x32xf32>
    %346 = vector.extract_strided_slice %337 {offsets = [0, 64], sizes = [2, 32], strides = [1, 1]} : vector<2x128xf32> to vector<2x32xf32>
    %347 = math.tanh %346 : vector<2x32xf32>
    %348 = arith.mulf %344, %304 : vector<2x32xf32>
    %349 = arith.mulf %343, %347 : vector<2x32xf32>
    %350 = arith.addf %348, %349 : vector<2x32xf32>
    %351 = math.tanh %350 : vector<2x32xf32>
    %352 = arith.mulf %345, %351 : vector<2x32xf32>
    %353 = tpu.concatenate %352, %326 in 1 : vector<2x32xf32>, vector<2x32xf32> -> vector<2x64xf32>
    %354 = arith.truncf %353 : vector<2x64xf32> to vector<2x64xbf16>
    %cst_58 = arith.constant dense<0.000000e+00> : vector<2x128xf32>
    %355 = tpu.matmul %354, %1, %cst_58 {dimension_numbers = #tpu.dot_dimension_numbers<[1], [0], [0], [1], [0, 0, 1, 1], [], []>} : vector<2x64xbf16>, vector<64x128xbf16>, vector<2x128xf32> -> vector<2x128xf32>
    %356 = vector.broadcast %3 : vector<1x128xf32> to vector<2x128xf32>
    %357 = arith.addf %355, %356 : vector<2x128xf32>
    %358 = arith.negf %357 : vector<2x128xf32>
    %359 = math.exp %358 : vector<2x128xf32>
    %cst_59 = arith.constant 1.000000e+00 : f32
    %360 = vector.broadcast %cst_59 : f32 to vector<2x128xf32>
    %361 = arith.addf %360, %359 : vector<2x128xf32>
    %362 = arith.divf %360, %361 : vector<2x128xf32>
    %363 = vector.extract_strided_slice %362 {offsets = [0, 0], sizes = [2, 32], strides = [1, 1]} : vector<2x128xf32> to vector<2x32xf32>
    %364 = vector.extract_strided_slice %362 {offsets = [0, 32], sizes = [2, 32], strides = [1, 1]} : vector<2x128xf32> to vector<2x32xf32>
    %365 = vector.extract_strided_slice %362 {offsets = [0, 96], sizes = [2, 32], strides = [1, 1]} : vector<2x128xf32> to vector<2x32xf32>
    %366 = vector.extract_strided_slice %357 {offsets = [0, 64], sizes = [2, 32], strides = [1, 1]} : vector<2x128xf32> to vector<2x32xf32>
    %367 = math.tanh %366 : vector<2x32xf32>
    %368 = arith.mulf %364, %324 : vector<2x32xf32>
    %369 = arith.mulf %363, %367 : vector<2x32xf32>
    %370 = arith.addf %368, %369 : vector<2x32xf32>
    %371 = math.tanh %370 : vector<2x32xf32>
    %372 = arith.mulf %365, %371 : vector<2x32xf32>
    %c0_60 = arith.constant 0 : index
    %c7 = arith.constant 7 : index
    %c0_61 = arith.constant 0 : index
    %373 = vector.load %arg12[%c0_60, %c7, %c0_61] : memref<2x8x32xf32, #tpu.memory_space<vmem>>, vector<2x1x32xf32>
    %374 = vector.shape_cast %373 : vector<2x1x32xf32> to vector<2x32xf32>
    %375 = vector.shape_cast %372 : vector<2x32xf32> to vector<2x1x32xf32>
    tpu.vector_store %arg12[%c0_60, %c7, %c0_61], %375 {strides = array<i32>} : memref<2x8x32xf32, #tpu.memory_space<vmem>>, vector<2x1x32xf32>,
    %376 = arith.addf %330, %372 : vector<2x32xf32>
    %cst_62 = arith.constant 1.250000e-01 : f32
    %377 = vector.broadcast %cst_62 : f32 to vector<2x32xf32>
    %378 = arith.mulf %376, %377 : vector<2x32xf32>
    %c0_63 = arith.constant 0 : index
    %c0_64 = arith.constant 0 : index
    %379 = vector.load %arg8[%c0_63, %c0_64] : memref<2x32xf32, #tpu.memory_space<vmem>>, vector<2x32xf32>
    tpu.vector_store %arg8[%c0_63, %c0_64], %378 {strides = array<i32>} : memref<2x32xf32, #tpu.memory_space<vmem>>, vector<2x32xf32>,
    %c0_65 = arith.constant 0 : index
    %c0_66 = arith.constant 0 : index
    %c0_67 = arith.constant 0 : index
    %380 = vector.load %arg12[%c0_65, %c0_66, %c0_67] : memref<2x8x32xf32, #tpu.memory_space<vmem>>, vector<2x8x32xf32>
    %c0_68 = arith.constant 0 : index
    %c0_69 = arith.constant 0 : index
    %381 = vector.load %arg6[%c0_68, %c0_69] : memref<32x2xf32, #tpu.memory_space<vmem>>, vector<32x2xf32>
    %cst_70 = arith.constant dense<0.000000e+00> : vector<2x8x2xf32>
    %382 = tpu.matmul %380, %381, %cst_70 {dimension_numbers = #tpu.dot_dimension_numbers<[2], [0], [0, 1], [1], [0, 0, 0, 1, 1, 1], [], []>} : vector<2x8x32xf32>, vector<32x2xf32>, vector<2x8x2xf32> -> vector<2x8x2xf32>
    %c0_71 = arith.constant 0 : index
    %c0_72 = arith.constant 0 : index
    %383 = vector.load %arg7[%c0_71, %c0_72] : memref<1x2xf32, #tpu.memory_space<vmem>>, vector<1x2xf32>
    %384 = vector.shape_cast %383 : vector<1x2xf32> to vector<1x1x2xf32>
    %385 = vector.broadcast %384 : vector<1x1x2xf32> to vector<2x8x2xf32>
    %386 = arith.addf %382, %385 : vector<2x8x2xf32>
    %c0_73 = arith.constant 0 : index
    %c0_74 = arith.constant 0 : index
    %c0_75 = arith.constant 0 : index
    %387 = vector.load %arg9[%c0_73, %c0_74, %c0_75] : memref<2x8x2xf32, #tpu.memory_space<vmem>>, vector<2x8x2xf32>
    tpu.vector_store %arg9[%c0_73, %c0_74, %c0_75], %386 {strides = array<i32>} : memref<2x8x2xf32, #tpu.memory_space<vmem>>, vector<2x8x2xf32>,
    %c0_76 = arith.constant 0 : index
    %c0_77 = arith.constant 0 : index
    %c0_78 = arith.constant 0 : index
    %388 = vector.load %arg10[%c0_76, %c0_77, %c0_78] : memref<2x2x32xf32, #tpu.memory_space<vmem>>, vector<1x2x32xf32>
    %389 = vector.shape_cast %388 : vector<1x2x32xf32> to vector<2x32xf32>
    %390 = vector.shape_cast %352 : vector<2x32xf32> to vector<1x2x32xf32>
    tpu.vector_store %arg10[%c0_76, %c0_77, %c0_78], %390 {strides = array<i32>} : memref<2x2x32xf32, #tpu.memory_space<vmem>>, vector<1x2x32xf32>,
    %c1_79 = arith.constant 1 : index
    %c0_80 = arith.constant 0 : index
    %c0_81 = arith.constant 0 : index
    %391 = vector.load %arg10[%c1_79, %c0_80, %c0_81] : memref<2x2x32xf32, #tpu.memory_space<vmem>>, vector<1x2x32xf32>
    %392 = vector.shape_cast %391 : vector<1x2x32xf32> to vector<2x32xf32>
    %393 = vector.shape_cast %372 : vector<2x32xf32> to vector<1x2x32xf32>
    tpu.vector_store %arg10[%c1_79, %c0_80, %c0_81], %393 {strides = array<i32>} : memref<2x2x32xf32, #tpu.memory_space<vmem>>, vector<1x2x32xf32>,
    %c0_82 = arith.constant 0 : index
    %c0_83 = arith.constant 0 : index
    %c0_84 = arith.constant 0 : index
    %394 = vector.load %arg11[%c0_82, %c0_83, %c0_84] : memref<2x2x32xf32, #tpu.memory_space<vmem>>, vector<1x2x32xf32>
    %395 = vector.shape_cast %394 : vector<1x2x32xf32> to vector<2x32xf32>
    %396 = vector.shape_cast %350 : vector<2x32xf32> to vector<1x2x32xf32>
    tpu.vector_store %arg11[%c0_82, %c0_83, %c0_84], %396 {strides = array<i32>} : memref<2x2x32xf32, #tpu.memory_space<vmem>>, vector<1x2x32xf32>,
    %c1_85 = arith.constant 1 : index
    %c0_86 = arith.constant 0 : index
    %c0_87 = arith.constant 0 : index
    %397 = vector.load %arg11[%c1_85, %c0_86, %c0_87] : memref<2x2x32xf32, #tpu.memory_space<vmem>>, vector<1x2x32xf32>
    %398 = vector.shape_cast %397 : vector<1x2x32xf32> to vector<2x32xf32>
    %399 = vector.shape_cast %370 : vector<2x32xf32> to vector<1x2x32xf32>
    tpu.vector_store %arg11[%c1_85, %c0_86, %c0_87], %399 {strides = array<i32>} : memref<2x2x32xf32, #tpu.memory_space<vmem>>, vector<1x2x32xf32>,
    return
  }
}

</mosaic_0001>

<bundles_post_ra>
// kernel: tc_encoder_forward.1
= control target key start
LH: loop header
LB: loop body
LE: loop exit
PB: predicated region body
PF: predicated region fallthrough
CT: control target
= control target key end

     0   :  { %17 = vsyncpa [#allocation4], 0  ;;  %vm64_vm0 = vcmask 1041408   ;;  %s2794_s0 = inlined_call_operand.vmem [shape: f32[2,8,4], index: 0, kind: input, shape index: {}]   ;;  %s2795_s1 = inlined_call_operand.vmem [shape: bf16[4,128], index: 1, kind: input, shape index: {}]   ;;  %s2796_s2 = inlined_call_operand.vmem [shape: bf16[32,128], index: 2, kind: input, shape index: {}]   ;;  %s2797_s3 = inlined_call_operand.vmem [shape: f32[1,128], index: 3, kind: input, shape index: {}]   ;;  %s2798_s4 = inlined_call_operand.vmem [shape: bf16[64,128], index: 4, kind: input, shape index: {}]   ;;  %s2799_s5 = inlined_call_operand.vmem [shape: f32[1,128], index: 5, kind: input, shape index: {}]   ;;  %s2800_s6 = inlined_call_operand.vmem [shape: f32[32,2], index: 6, kind: input, shape index: {}]   ;;  %s2801_s7 = inlined_call_operand.vmem [shape: f32[1,2], index: 7, kind: input, shape index: {}]   ;;  %s2802_s8 = inlined_call_operand.hbm [shape: f32[2,32], index: 8, kind: output, shape index: {0}]   ;;  %s2803_s9 = inlined_call_operand.vmem [shape: f32[2,8,2], index: 9, kind: output, shape index: {1}]   ;;  %s2804_s10 = inlined_call_operand.hbm [shape: f32[2,2,32], index: 10, kind: output, shape index: {2}]   ;;  %s2805_s11 = inlined_call_operand.hbm [shape: f32[2,2,32], index: 11, kind: output, shape index: {3}]  }
   0x1   :  { %v2272_v0 = vld [vmem:[%s2796_s2 + $0x8] sm:$0xff]  ;;  %v54_v1 = vld [vmem:[%s2795_s1] sm:$0x3] }
   0x2   :  { %v50_v2 = vld [vmem:[%s2794_s0] sm:$0xff]  ;;  %v66_v3 = vsel %vm64_vm0, %v54_v1, 0  ;;  %v51_v4 = vld [vmem:[%s2794_s0 + $0x8] sm:$0xff]  ;;  %104 = vmatpush.bf16.msra.mxu1 %v2272_v0 }
   0x3   :  { %v52_v5 = vpack.c.bf16 %v50_v2, %v50_v2  ;;  %v2286_v6 = vld [vmem:[%s2796_s2] sm:$0xff]  ;;  %75 = vmatpush.bf16.msra.mxu0 %v66_v3  ;;  %v53_v7 = vpack.c.bf16 %v51_v4, %v51_v4 }
   0x4   :  { %18 = vsyncpa [#allocation6], 0  ;;  %321 = vmatpush.bf16.msra.mxu3 %v2272_v0  ;;  %vm60_vm1 = vcmask 31744   ;;  %v2201_v11 = vmov 0   ;;  %v2303_v16 = vld [vmem:[%s2797_s3] ss:$0 sm:$0xff] }
   0x5   :  { %v57_v8 = vunpack.c.l.b16 %v52_v5  ;;  %v58_v9 = vunpack.c.l.b16 %v53_v7  ;;  %s2202_s2 = smov 64   ;;  %s2203_s27 = smov 32   ;;  %v2324_v62 = vld [vmem:[%s2798_s4 + $0x18] sm:$0xff]  ;;  %v2330_v63 = vld [vmem:[%s2798_s4 + $0x10] sm:$0xff]  ;;  %v2338_v1 = vld [vmem:[%s2798_s4 + $0x8] sm:$0xff]  ;;  %vm199_vm10 = vcmask 1041409  }
   0x6   :  { %105 = vmatpush.bf16.msra.mxu1 %v2286_v6  ;;  %241 = vmatpush.bf16.msra.mxu2 %v2324_v62  ;;  %vm94_vm11 = vcmask 261120   ;;  %vm233_vm12 = vcmask 523264   ;;  %s1808_s28 = sshll.u32 %s2804_s10, 4  ;;  %s2205_s29 = smov [#allocation5]   ;;  %s1809_s28 = int_to_ptr.hbm [resolvable:$true] %s1808_s28 }
   0x7   :  { %v59_v10 = vpack.c.b16 %v58_v9, %v57_v8  ;;  %444 = vmatpush.bf16.msrb.mxu0 %v2324_v62  ;;  %s1806_s30 = sshll.u32 %s2205_s29, 4  ;;  %s2206_s12 = smov 2   ;;  %s1807_s30 = int_to_ptr.vmem [resolvable:$true] %s1806_s30 }
   0x8   :  { %322 = vmatpush.bf16.msra.mxu3 %v2286_v6  ;;  %s1796_s15 = sshll.u32 %s2802_s8, 4  ;;  %s2207_s16 = smov [#allocation3]   ;;  %s1797_s15 = int_to_ptr.hbm [resolvable:$true] %s1796_s15 }
   0x9   :  { %1844 = vmatmul.msk.bf16.vlgmr.msra.gmra.mxu0 %vm60_vm1, %v59_v10  ;;  %106 = vmatmul.bf16.vlgmr.msra.gmra.mxu1 %v2201_v11  ;;  %s2208_s10 = smov [#allocation7]  }
   0xa   :  { %523 = vmatpush.bf16.msrb.mxu1 %v2272_v0  ;;  %242 = vmatpush.bf16.msra.mxu2 %v2330_v63  ;;  %s1819_s17 = sshll.u32 %s2208_s10, 4  ;;  %s1820_s17 = int_to_ptr.vmem [resolvable:$true] %s1819_s17 }
   0xb   :  { %445 = vmatpush.bf16.msrb.mxu0 %v2330_v63 }
   0xc   :  { %642 = vmatpush.bf16.msrb.mxu3 %v2324_v62 }
   0xe   :  { %524 = vmatpush.bf16.msrb.mxu1 %v2286_v6  ;;  %243 = vmatpush.bf16.msra.mxu2 %v2338_v1 }
   0xf   :  { %446 = vmatpush.bf16.msrb.mxu0 %v2338_v1 }
  0x10   :  { %643 = vmatpush.bf16.msrb.mxu3 %v2330_v63 }
  0x12   :  { %927 = vmatpush.bf16.msra.mxu1 %v2272_v0 }
  0x14   :  { %644 = vmatpush.bf16.msrb.mxu3 %v2338_v1 }
  0x16   :  { %928 = vmatpush.bf16.msra.mxu1 %v2286_v6 }
  0x86   :  { %v2296_v12 = vpop.f32.mrf.mxu0  ;;  %v107_v13 = vpop.f32.mrf.mxu1 }
  0x87   :  { %v112_v14 = vrot.slane %v107_v13, 1  ;;  %v115_v20 = vadd.f32 %v107_v13, %v2296_v12 }
  0x89   :  { %v120_v21 = vadd.f32 %v2303_v16, %v115_v20 }
  0x8b   :  { %v1853_v25 = vmul.f32 -1.442695, %v120_v21 }
  0x8e   :  { %v2298_v15 = vpop.f32.mrf.mxu0  ;;  %v109_v17 = vpop.f32.mrf.mxu1 }
  0x8f   :  { %v116_v18 = vadd.f32 %v112_v14, %v2298_v15 }
  0x91   :  { %v121_v19 = vadd.f32 %v2303_v16, %v116_v18 }
  0x93   :  { %1931 = vtanh.f32 %v121_v19  ;;  %v1854_v24 = vmul.f32 -1.442695, %v121_v19  ;;  %v2352_v19 = vld [vmem:[%s2798_s4] sm:$0xff]  ;;  %s1794_s4 = sshll.u32 %s2207_s16, 4  ;;  %s1795_s4 = int_to_ptr.vmem [resolvable:$true] %s1794_s4 }
  0x94   :  { %1933 = vtanh.f32 %v120_v21  ;;  %244 = vmatpush.bf16.msra.mxu2 %v2352_v19  ;;  %447 = vmatpush.bf16.msrb.mxu0 %v2352_v19 }
  0x95   :  { %1935 = vpow2.f32 %v1854_v24  ;;  %645 = vmatpush.bf16.msrb.mxu3 %v2352_v19  ;;  %v2375_v24 = vld [vmem:[%s2799_s5] ss:$0 sm:$0xff] }
  0x96   :  { %1937 = vpow2.f32 %v1853_v25 }
  0x98   :  { %722 = vmatpush.bf16.msrb.mxu2 %v2272_v0  ;;  %847 = vmatpush.bf16.msra.mxu0 %v2324_v62 }
  0x99   :  { %v1932_v22 = vpop.eup %1931 }
  0x9a   :  { %168 = vrot.lane.b32.xlu0 %v1932_v22, %s2202_s2  ;;  %v1934_v23 = vpop.eup %1933 }
  0x9b   :  { %v1936_v26 = vpop.eup %1935 }
  0x9c   :  { %v129_v27 = vadd.f32 1.0, %v1936_v26  ;;  %v1938_v28 = vpop.eup %1937  ;;  %723 = vmatpush.bf16.msrb.mxu2 %v2286_v6  ;;  %848 = vmatpush.bf16.msra.mxu0 %v2330_v63 }
  0x9d   :  { %v128_v29 = vadd.f32 1.0, %v1938_v28 }
  0x9e   :  { %1939 = vrcp.f32 %v129_v27  ;;  %v156_v38 = vand.u32 2147483648, %v129_v27  ;;  %vm150_vm3 = vweird.f32 %v129_v27  ;;  %v154_v39 = vand.u32 2147483647, %v129_v27 }
  0x9f   :  { %1941 = vrcp.f32 %v128_v29  ;;  %v141_v47 = vand.u32 2147483648, %v128_v29  ;;  %vm135_vm7 = vweird.f32 %v128_v29  ;;  %v139_v48 = vand.u32 2147483647, %v128_v29 }
  0xa0   :  { %v157_v42 = vor.u32 1.1754944e-38, %v156_v38  ;;  %vm155_vm5 = vcmp.eq.f32.partialorder %v154_v39, 8.507059e+37  ;;  %849 = vmatpush.bf16.msra.mxu0 %v2338_v1 }
  0xa1   :  { %v142_v50 = vor.u32 1.1754944e-38, %v141_v47  ;;  %vm140_vm9 = vcmp.eq.f32.partialorder %v139_v48, 8.507059e+37 }
  0xa2   :  { %166 = vrot.lane.b32.xlu0 %v1934_v23, %s2202_s2 }
  0xa4   :  { %v1940_v30 = vpop.eup %1939  ;;  %850 = vmatpush.bf16.msra.mxu0 %v2352_v19 }
  0xa5   :  { %v146_v31 = vmul.f32 %v1940_v30, %v129_v27  ;;  %v1942_v33 = vpop.eup %1941  ;;  %vm151_vm2 = vweird.f32 %v1940_v30 }
  0xa6   :  { %v131_v35 = vmul.f32 %v1942_v33, %v128_v29  ;;  %vm152_vm4 = vmor %vm150_vm3, %vm151_vm2  ;;  %vm136_vm6 = vweird.f32 %v1942_v33 }
  0xa7   :  { %v147_v32 = vsub.f32 1.0, %v146_v31  ;;  %vm137_vm8 = vmor %vm135_vm7, %vm136_vm6 }
  0xa8   :  { %v132_v37 = vsub.f32 1.0, %v131_v35 }
  0xa9   :  { %v148_v34 = vmul.f32 %v1940_v30, %v147_v32 }
  0xaa   :  { %v133_v41 = vmul.f32 %v1942_v33, %v132_v37 }
  0xab   :  { %v149_v36 = vadd.f32 %v1940_v30, %v148_v34 }
  0xac   :  { %v134_v46 = vadd.f32 %v1942_v33, %v133_v41 }
  0xad   :  { %v153_v40 = vsel %vm152_vm4, %v1940_v30, %v149_v36 }
  0xae   :  { %v158_v44 = vsel %vm155_vm5, %v157_v42, %v153_v40  ;;  %v138_v49 = vsel %vm137_vm8, %v1942_v33, %v134_v46 }
  0xaf   :  { %v143_v51 = vsel %vm140_vm9, %v142_v50, %v138_v49  ;;  %v163_v54 = vmul.f32 0.0, %v158_v44  ;;  %vm419_vm9 = vcmask 1042434  }
  0xb0   :  { %v162_v57 = vmul.f32 0.0, %v143_v51 }
 0x10c   :  { %v169_v43 = vpop.permute.xlu0 %168 }
 0x10d   :  { %v173_v45 = vmul.f32 %v169_v43, %v158_v44 }
 0x10f   :  { %178 = vrot.lane.b32.xlu1 %v173_v45, %s2203_s27 }
 0x114   :  { %v167_v52 = vpop.permute.xlu0 %166 }
 0x115   :  { %v172_v53 = vmul.f32 %v167_v52, %v143_v51 }
 0x117   :  { %176 = vrot.lane.b32.xlu1 %v172_v53, %s2203_s27 }
 0x181   :  { %v179_v55 = vpop.permute.xlu1 %178 }
 0x182   :  { %v2313_v56 = vadd.f32 %v179_v55, %v163_v54 }
 0x184   :  { %1943 = vtanh.f32 %v2313_v56 }
 0x189   :  { %v177_v58 = vpop.permute.xlu1 %176 }
 0x18a   :  { %v1944_v59 = vpop.eup %1943  ;;  %v2316_v60 = vadd.f32 %v177_v58, %v162_v57 }
 0x18b   :  { %190 = vrot.lane.b32.xlu2 %v1944_v59, %s2202_s2 }
 0x18c   :  { %1945 = vtanh.f32 %v2316_v60 }
 0x192   :  { %v1946_v61 = vpop.eup %1945 }
 0x193   :  { %188 = vrot.lane.b32.xlu2 %v1946_v61, %s2202_s2 }
 0x1e5   :  { %v191_v2 = vpop.permute.xlu2 %190 }
 0x1e6   :  { %v195_v3 = vmul.f32 %v191_v2, %v158_v44 }
 0x1e8   :  { %v302_v4 = vpack.c.bf16 %v195_v3, %v195_v3  ;;  %v198_v7 = vrot.slane %v195_v3, 7 }
 0x1ea   :  { %v306_v8 = vunpack.c.l.b16 %v302_v4 }
 0x1ec   :  { %v307_v13 = vrot.slane %v306_v8, 7 }
 0x1ed   :  { %v189_v5 = vpop.permute.xlu2 %188 }
 0x1ee   :  { %v194_v9 = vmul.f32 %v189_v5, %v143_v51 }
 0x1f0   :  { %v301_v10 = vpack.c.bf16 %v194_v9, %v194_v9  ;;  %v200_v11 = vsel %vm199_vm10, %v198_v7, %v194_v9 }
 0x1f1   :  { %201 = vrot.lane.b32.xlu1 %v200_v11, %s2203_s27 }
 0x1f2   :  { %v305_v14 = vunpack.c.l.b16 %v301_v10 }
 0x1f4   :  { %v308_v17 = vsel %vm199_vm10, %v307_v13, %v305_v14 }
 0x1f5   :  { %v309_v18 = vpack.c.b16 %v308_v17, %v308_v17 }
 0x1f7   :  { %310 = vrot.lane.b32.xlu0 %v309_v18, %s2203_s27 }
 0x263   :  { %v202_v20 = vpop.permute.xlu1 %201 }
 0x264   :  { %v204_v21 = vsel %vm94_vm11, %v202_v20, 0.0 }
 0x265   :  { %v205_v22 = vpack.c.bf16 %v204_v21, %v204_v21 }
 0x267   :  { %1871 = vmatmul.msk.bf16.vlgmr.msra.gmra.mxu2 %vm233_vm12, %v205_v22 }
 0x268   :  { %1126 = vmatpush.bf16.msra.mxu2 %v2272_v0 }
 0x269   :  { %v311_v23 = vpop.permute.xlu0 %310 }
 0x26a   :  { %1873 = vmatmul.msk.bf16.vlgmr.msra.gmra.mxu3 %vm94_vm11, %v311_v23 }
 0x26b   :  { %1046 = vmatpush.bf16.msra.mxu3 %v2324_v62 }
 0x26c   :  { %1127 = vmatpush.bf16.msra.mxu2 %v2286_v6 }
 0x26f   :  { %1047 = vmatpush.bf16.msra.mxu3 %v2330_v63 }
 0x273   :  { %1048 = vmatpush.bf16.msra.mxu3 %v2338_v1 }
 0x277   :  { %1049 = vmatpush.bf16.msra.mxu3 %v2352_v19 }
 0x2ea   :  { %v246_v25 = vpop.f32.mrf.mxu2 }
 0x2eb   :  { %v247_v26 = vadd.f32 %v2375_v24, %v246_v25 }
 0x2ed   :  { %1947 = vtanh.f32 %v247_v26  ;;  %v324_v27 = vpop.f32.mrf.mxu3  ;;  %v1872_v41 = vmul.f32 -1.442695, %v247_v26 }
 0x2ee   :  { %v329_v28 = vrot.slane %v324_v27, 7  ;;  %v333_v29 = vadd.f32 %v324_v27, %v2298_v15 }
 0x2f0   :  { %v332_v30 = vadd.f32 %v329_v28, %v2296_v12  ;;  %v335_v31 = vadd.f32 %v2303_v16, %v333_v29 }
 0x2f2   :  { %v334_v32 = vadd.f32 %v2303_v16, %v332_v30  ;;  %1949 = vtanh.f32 %v335_v31  ;;  %v248_v33 = vpop.f32.mrf.mxu2  ;;  %v1875_v42 = vmul.f32 -1.442695, %v335_v31  ;;  %v378_v31 = vrot.slane %v2316_v60, 7 }
 0x2f3   :  { %v1948_v34 = vpop.eup %1947 }
 0x2f4   :  { %272 = vrot.lane.b32.xlu1 %v1948_v34, %s2202_s2  ;;  %1951 = vtanh.f32 %v334_v32  ;;  %v1874_v38 = vmul.f32 -1.442695, %v334_v32 }
 0x2f5   :  { %v326_v35 = vpop.f32.mrf.mxu3 }
 0x2f6   :  { %1953 = vpow2.f32 %v1874_v38 }
 0x2f8   :  { %v1950_v36 = vpop.eup %1949 }
 0x2f9   :  { %388 = vrot.lane.b32.xlu0 %v1950_v36, %s2202_s2 }
 0x2fa   :  { %v1952_v37 = vpop.eup %1951 }
 0x2fb   :  { %386 = vrot.lane.b32.xlu2 %v1952_v37, %s2202_s2 }
 0x2fc   :  { %v1954_v39 = vpop.eup %1953 }
 0x2fd   :  { %v342_v40 = vadd.f32 1.0, %v1954_v39  ;;  %v379_v39 = vrot.slane %v2313_v56, 7 }
 0x2ff   :  { %1955 = vrcp.f32 %v342_v40  ;;  %v355_v53 = vand.u32 2147483648, %v342_v40  ;;  %vm349_vm14 = vweird.f32 %v342_v40  ;;  %v353_v54 = vand.u32 2147483647, %v342_v40 }
 0x300   :  { %1957 = vpow2.f32 %v1872_v41 }
 0x301   :  { %1959 = vpow2.f32 %v1875_v42  ;;  %v356_v58 = vor.u32 1.1754944e-38, %v355_v53  ;;  %vm354_vm0 = vcmp.eq.f32.partialorder %v353_v54, 8.507059e+37 }
 0x305   :  { %v1956_v43 = vpop.eup %1955 }
 0x306   :  { %v1958_v44 = vpop.eup %1957  ;;  %v345_v45 = vmul.f32 %v1956_v43, %v342_v40  ;;  %vm350_vm13 = vweird.f32 %v1956_v43 }
 0x307   :  { %v253_v46 = vadd.f32 1.0, %v1958_v44  ;;  %v1960_v48 = vpop.eup %1959  ;;  %vm351_vm15 = vmor %vm349_vm14, %vm350_vm13 }
 0x308   :  { %v346_v47 = vsub.f32 1.0, %v345_v45  ;;  %v343_v49 = vadd.f32 1.0, %v1960_v48 }
 0x309   :  { %1961 = vrcp.f32 %v253_v46  ;;  %v265_v10 = vand.u32 2147483648, %v253_v46  ;;  %vm259_vm2 = vweird.f32 %v253_v46  ;;  %v263_v13 = vand.u32 2147483647, %v253_v46 }
 0x30a   :  { %v347_v50 = vmul.f32 %v1956_v43, %v346_v47  ;;  %1963 = vrcp.f32 %v343_v49  ;;  %v370_v20 = vand.u32 2147483648, %v343_v49  ;;  %vm364_vm6 = vweird.f32 %v343_v49 }
 0x30b   :  { %v266_v17 = vor.u32 1.1754944e-38, %v265_v10  ;;  %vm264_vm5 = vcmp.eq.f32.partialorder %v263_v13, 8.507059e+37  ;;  %v368_v23 = vand.u32 2147483647, %v343_v49 }
 0x30c   :  { %v348_v51 = vadd.f32 %v1956_v43, %v347_v50  ;;  %v371_v27 = vor.u32 1.1754944e-38, %v370_v20 }
 0x30d   :  { %vm369_vm8 = vcmp.eq.f32.partialorder %v368_v23, 8.507059e+37 }
 0x30e   :  { %v352_v55 = vsel %vm351_vm15, %v1956_v43, %v348_v51 }
 0x30f   :  { %v1962_v52 = vpop.eup %1961  ;;  %v357_v2 = vsel %vm354_vm0, %v356_v58, %v352_v55 }
 0x310   :  { %v255_v57 = vmul.f32 %v1962_v52, %v253_v46  ;;  %v1964_v59 = vpop.eup %1963  ;;  %vm260_vm1 = vweird.f32 %v1962_v52  ;;  %v382_v32 = vmul.f32 %v378_v31, %v357_v2 }
 0x311   :  { %v360_v5 = vmul.f32 %v1964_v59, %v343_v49  ;;  %vm261_vm3 = vmor %vm259_vm2, %vm260_vm1  ;;  %vm365_vm4 = vweird.f32 %v1964_v59 }
 0x312   :  { %v256_v4 = vsub.f32 1.0, %v255_v57  ;;  %vm366_vm7 = vmor %vm364_vm6, %vm365_vm4 }
 0x313   :  { %v361_v8 = vsub.f32 1.0, %v360_v5 }
 0x314   :  { %v257_v7 = vmul.f32 %v1962_v52, %v256_v4 }
 0x315   :  { %v362_v11 = vmul.f32 %v1964_v59, %v361_v8 }
 0x316   :  { %v258_v9 = vadd.f32 %v1962_v52, %v257_v7 }
 0x317   :  { %v363_v18 = vadd.f32 %v1964_v59, %v362_v11 }
 0x318   :  { %v262_v14 = vsel %vm261_vm3, %v1962_v52, %v258_v9 }
 0x319   :  { %v267_v22 = vsel %vm264_vm5, %v266_v17, %v262_v14  ;;  %v367_v26 = vsel %vm366_vm7, %v1964_v59, %v363_v18 }
 0x31a   :  { %v372_v29 = vsel %vm369_vm8, %v371_v27, %v367_v26  ;;  %v270_v36 = vmul.f32 0.0, %v267_v22 }
 0x31b   :  { %v383_v40 = vmul.f32 %v379_v39, %v372_v29 }
 0x355   :  { %v387_v61 = vpop.permute.xlu2 %386 }
 0x356   :  { %v392_v3 = vmul.f32 %v387_v61, %v357_v2 }
 0x358   :  { %396 = vrot.lane.b32.xlu2 %v392_v3, %s2203_s27 }
 0x366   :  { %v273_v21 = vpop.permute.xlu1 %272 }
 0x367   :  { %v275_v25 = vmul.f32 %v273_v21, %v267_v22 }
 0x369   :  { %277 = vrot.lane.b32.xlu1 %v275_v25, %s2203_s27 }
 0x36b   :  { %v389_v28 = vpop.permute.xlu0 %388 }
 0x36c   :  { %v393_v30 = vmul.f32 %v389_v28, %v372_v29 }
 0x36e   :  { %398 = vrot.lane.b32.xlu0 %v393_v30, %s2203_s27 }
 0x3b2   :  { %v397_v33 = vpop.permute.xlu2 %396 }
 0x3b3   :  { %v2389_v34 = vadd.f32 %v397_v33, %v382_v32 }
 0x3b5   :  { %1965 = vtanh.f32 %v2389_v34 }
 0x3bb   :  { %v1966_v35 = vpop.eup %1965 }
 0x3bc   :  { %408 = vrot.lane.b32.xlu2 %v1966_v35, %s2202_s2 }
 0x3db   :  { %v278_v37 = vpop.permute.xlu1 %277 }
 0x3dc   :  { %v2393_v38 = vadd.f32 %v278_v37, %v270_v36 }
 0x3de   :  { %1967 = vtanh.f32 %v2393_v38 }
 0x3e0   :  { %v399_v41 = vpop.permute.xlu0 %398 }
 0x3e1   :  { %v2397_v60 = vadd.f32 %v399_v41, %v383_v40 }
 0x3e3   :  { %1969 = vtanh.f32 %v2397_v60 }
 0x3e4   :  { %v1968_v42 = vpop.eup %1967 }
 0x3e5   :  { %283 = vrot.lane.b32.xlu1 %v1968_v42, %s2202_s2 }
 0x3e9   :  { %v1970_v43 = vpop.eup %1969 }
 0x3ea   :  { %410 = vrot.lane.b32.xlu0 %v1970_v43, %s2202_s2 }
 0x416   :  { %v409_v44 = vpop.permute.xlu2 %408 }
 0x417   :  { %v414_v45 = vmul.f32 %v409_v44, %v357_v2 }
 0x419   :  { %v503_v56 = vpack.c.bf16 %v414_v45, %v414_v45 }
 0x41b   :  { %v507_v50 = vunpack.c.l.b16 %v503_v56 }
 0x41d   :  { %v509_v54 = vrot.slane %v507_v50, 1 }
 0x457   :  { %v284_v46 = vpop.permute.xlu1 %283 }
 0x458   :  { %v2402_v47 = vmul.f32 %v284_v46, %v267_v22 }
 0x45a   :  { %v424_v48 = vrot.slane %v2402_v47, 7 }
 0x45c   :  { %v411_v49 = vpop.permute.xlu0 %410  ;;  %425 = vrot.lane.b32.xlu1 %v424_v48, %s2202_s2 }
 0x45d   :  { %v415_v51 = vmul.f32 %v411_v49, %v372_v29 }
 0x45f   :  { %v418_v52 = vrot.slane %v415_v51, 7  ;;  %v504_v53 = vpack.c.bf16 %v415_v51, %v415_v51 }
 0x461   :  { %v508_v55 = vunpack.c.l.b16 %v504_v53  ;;  %v420_v57 = vsel %vm419_vm9, %v418_v52, %v414_v45  ;;  %vm622_vm9 = vcmask 1043459  }
 0x462   :  { %421 = vrot.lane.b32.xlu0 %v420_v57, %s2203_s27 }
 0x463   :  { %v510_v58 = vsel %vm199_vm10, %v508_v55, %v509_v54 }
 0x464   :  { %v511_v59 = vpack.c.b16 %v510_v58, %v510_v58 }
 0x466   :  { %512 = vrot.lane.b32.xlu2 %v511_v59, %s2203_s27 }
 0x4c0   :  { %v513_v61 = vpop.permute.xlu2 %512 }
 0x4c1   :  { %1878 = vmatmul.msk.bf16.vlgmr.msrb.gmra.mxu1 %vm94_vm11, %v513_v61 }
 0x4c2   :  { %1331 = vmatpush.bf16.msrb.mxu1 %v2272_v0 }
 0x4c6   :  { %1332 = vmatpush.bf16.msrb.mxu1 %v2286_v6 }
 0x4ce   :  { %v426_v2 = vpop.permute.xlu1 %425 }
 0x4d4   :  { %v422_v3 = vpop.permute.xlu0 %421 }
 0x4d5   :  { %v428_v4 = vsel %vm94_vm11, %v422_v3, %v426_v2 }
 0x4d6   :  { %v429_v5 = vpack.c.bf16 %v428_v4, %v428_v4 }
 0x4d8   :  { %v433_v7 = vshll.u32 %v429_v5, 16  ;;  %v431_v8 = vshrl.u32 %v429_v5, 16 }
 0x4da   :  { %v435_v9 = vrot.slane %v433_v7, 1 }
 0x4dc   :  { %v436_v10 = vor.u32 %v435_v9, %v431_v8 }
 0x4de   :  { %1876 = vmatmul.msk.bf16.vlgmr.msrb.gmra.mxu0 %vm233_vm12, %v436_v10 }
 0x4df   :  { %1251 = vmatpush.bf16.msrb.mxu0 %v2324_v62 }
 0x4e3   :  { %1252 = vmatpush.bf16.msrb.mxu0 %v2330_v63 }
 0x4e7   :  { %1253 = vmatpush.bf16.msrb.mxu0 %v2338_v1 }
 0x4eb   :  { %1254 = vmatpush.bf16.msrb.mxu0 %v2352_v19 }
 0x53e   :  { %v526_v11 = vpop.f32.mrf.mxu1 }
 0x53f   :  { %v531_v13 = vrot.slane %v526_v11, 6  ;;  %v532_v14 = vrot.slane %v526_v11, 7 }
 0x541   :  { %v535_v17 = vadd.f32 %v531_v13, %v2296_v12  ;;  %v536_v18 = vadd.f32 %v532_v14, %v2298_v15 }
 0x543   :  { %v537_v20 = vadd.f32 %v2303_v16, %v535_v17  ;;  %v538_v21 = vadd.f32 %v2303_v16, %v536_v18 }
 0x545   :  { %1971 = vtanh.f32 %v537_v20  ;;  %v1879_v30 = vmul.f32 -1.442695, %v537_v20  ;;  %v1880_v35 = vmul.f32 -1.442695, %v538_v21 }
 0x546   :  { %1973 = vtanh.f32 %v538_v21  ;;  %v528_v22 = vpop.f32.mrf.mxu1 }
 0x54b   :  { %v1972_v23 = vpop.eup %1971 }
 0x54c   :  { %v1974_v25 = vpop.eup %1973  ;;  %589 = vrot.lane.b32.xlu2 %v1972_v23, %s2202_s2 }
 0x54d   :  { %591 = vrot.lane.b32.xlu0 %v1974_v25, %s2202_s2  ;;  %v581_v25 = vrot.slane %v2389_v34, 7 }
 0x55b   :  { %v449_v26 = vpop.f32.mrf.mxu0 }
 0x55c   :  { %v450_v27 = vadd.f32 %v2375_v24, %v449_v26 }
 0x55e   :  { %1975 = vtanh.f32 %v450_v27  ;;  %v1877_v51 = vmul.f32 -1.442695, %v450_v27 }
 0x55f   :  { %1977 = vpow2.f32 %v1879_v30  ;;  %v582_v30 = vrot.slane %v2397_v60, 7 }
 0x563   :  { %v451_v28 = vpop.f32.mrf.mxu0 }
 0x564   :  { %v1976_v29 = vpop.eup %1975 }
 0x565   :  { %475 = vrot.lane.b32.xlu1 %v1976_v29, %s2202_s2  ;;  %v1978_v31 = vpop.eup %1977 }
 0x566   :  { %v545_v32 = vadd.f32 1.0, %v1978_v31 }
 0x568   :  { %1979 = vrcp.f32 %v545_v32  ;;  %v558_v43 = vand.u32 2147483648, %v545_v32  ;;  %vm552_vm14 = vweird.f32 %v545_v32  ;;  %v556_v44 = vand.u32 2147483647, %v545_v32 }
 0x569   :  { %1981 = vpow2.f32 %v1880_v35 }
 0x56a   :  { %v559_v46 = vor.u32 1.1754944e-38, %v558_v43  ;;  %vm557_vm0 = vcmp.eq.f32.partialorder %v556_v44, 8.507059e+37 }
 0x56e   :  { %v1980_v33 = vpop.eup %1979 }
 0x56f   :  { %v548_v36 = vmul.f32 %v1980_v33, %v545_v32  ;;  %v1982_v40 = vpop.eup %1981  ;;  %vm553_vm13 = vweird.f32 %v1980_v33 }
 0x570   :  { %v546_v41 = vadd.f32 1.0, %v1982_v40  ;;  %vm554_vm15 = vmor %vm552_vm14, %vm553_vm13 }
 0x571   :  { %v549_v37 = vsub.f32 1.0, %v548_v36 }
 0x572   :  { %1983 = vrcp.f32 %v546_v41  ;;  %v573_v59 = vand.u32 2147483648, %v546_v41  ;;  %vm567_vm2 = vweird.f32 %v546_v41  ;;  %v571_v61 = vand.u32 2147483647, %v546_v41 }
 0x573   :  { %v550_v39 = vmul.f32 %v1980_v33, %v549_v37  ;;  %1985 = vpow2.f32 %v1877_v51 }
 0x574   :  { %v574_v3 = vor.u32 1.1754944e-38, %v573_v59  ;;  %vm572_vm4 = vcmp.eq.f32.partialorder %v571_v61, 8.507059e+37 }
 0x575   :  { %v551_v42 = vadd.f32 %v1980_v33, %v550_v39 }
 0x577   :  { %v555_v45 = vsel %vm554_vm15, %v1980_v33, %v551_v42 }
 0x578   :  { %v2426_v48 = vsel %vm557_vm0, %v559_v46, %v555_v45  ;;  %v1984_v50 = vpop.eup %1983 }
 0x579   :  { %v563_v52 = vmul.f32 %v1984_v50, %v546_v41  ;;  %v1986_v54 = vpop.eup %1985  ;;  %vm568_vm1 = vweird.f32 %v1984_v50  ;;  %v585_v26 = vmul.f32 %v581_v25, %v2426_v48 }
 0x57a   :  { %v456_v57 = vadd.f32 1.0, %v1986_v54  ;;  %vm569_vm3 = vmor %vm567_vm2, %vm568_vm1 }
 0x57b   :  { %v564_v53 = vsub.f32 1.0, %v563_v52 }
 0x57c   :  { %1987 = vrcp.f32 %v456_v57  ;;  %v468_v14 = vand.u32 2147483648, %v456_v57  ;;  %vm462_vm6 = vweird.f32 %v456_v57  ;;  %v466_v17 = vand.u32 2147483647, %v456_v57 }
 0x57d   :  { %v565_v55 = vmul.f32 %v1984_v50, %v564_v53 }
 0x57e   :  { %v469_v20 = vor.u32 1.1754944e-38, %v468_v14  ;;  %vm467_vm8 = vcmp.eq.f32.partialorder %v466_v17, 8.507059e+37 }
 0x57f   :  { %v566_v58 = vadd.f32 %v1984_v50, %v565_v55 }
 0x581   :  { %v570_v2 = vsel %vm569_vm3, %v1984_v50, %v566_v58 }
 0x582   :  { %v575_v5 = vsel %vm572_vm4, %v574_v3, %v570_v2  ;;  %v1988_v8 = vpop.eup %1987 }
 0x583   :  { %v458_v9 = vmul.f32 %v1988_v8, %v456_v57  ;;  %vm463_vm5 = vweird.f32 %v1988_v8  ;;  %v586_v31 = vmul.f32 %v582_v30, %v575_v5 }
 0x584   :  { %vm464_vm7 = vmor %vm462_vm6, %vm463_vm5 }
 0x585   :  { %v459_v10 = vsub.f32 1.0, %v458_v9 }
 0x587   :  { %v460_v11 = vmul.f32 %v1988_v8, %v459_v10 }
 0x589   :  { %v461_v13 = vadd.f32 %v1988_v8, %v460_v11 }
 0x58b   :  { %v465_v18 = vsel %vm464_vm7, %v1988_v8, %v461_v13 }
 0x58c   :  { %v470_v22 = vsel %vm467_vm8, %v469_v20, %v465_v18 }
 0x58d   :  { %v473_v34 = vmul.f32 %v470_v22, %v2393_v38 }
 0x5a6   :  { %v590_v56 = vpop.permute.xlu2 %589 }
 0x5a7   :  { %v595_v49 = vmul.f32 %v590_v56, %v2426_v48 }
 0x5a9   :  { %599 = vrot.lane.b32.xlu2 %v595_v49, %s2203_s27 }
 0x5bf   :  { %v592_v4 = vpop.permute.xlu0 %591 }
 0x5c0   :  { %v596_v7 = vmul.f32 %v592_v4, %v575_v5 }
 0x5c2   :  { %601 = vrot.lane.b32.xlu0 %v596_v7, %s2203_s27 }
 0x5d7   :  { %v476_v21 = vpop.permute.xlu1 %475 }
 0x5d8   :  { %v478_v23 = vmul.f32 %v476_v21, %v470_v22 }
 0x5da   :  { %480 = vrot.lane.b32.xlu1 %v478_v23, %s2203_s27 }
 0x603   :  { %v600_v27 = vpop.permute.xlu2 %599 }
 0x604   :  { %v2434_v28 = vadd.f32 %v600_v27, %v585_v26 }
 0x606   :  { %1989 = vtanh.f32 %v2434_v28 }
 0x60c   :  { %v1990_v29 = vpop.eup %1989 }
 0x60d   :  { %611 = vrot.lane.b32.xlu2 %v1990_v29, %s2202_s2 }
 0x634   :  { %v602_v32 = vpop.permute.xlu0 %601 }
 0x635   :  { %v2439_v33 = vadd.f32 %v602_v32, %v586_v31 }
 0x637   :  { %1991 = vtanh.f32 %v2439_v33 }
 0x63d   :  { %v1992_v35 = vpop.eup %1991 }
 0x63e   :  { %613 = vrot.lane.b32.xlu0 %v1992_v35, %s2202_s2 }
 0x64c   :  { %v481_v36 = vpop.permute.xlu1 %480 }
 0x64d   :  { %v2444_v37 = vadd.f32 %v481_v36, %v473_v34 }
 0x64f   :  { %1993 = vtanh.f32 %v2444_v37 }
 0x655   :  { %v1994_v39 = vpop.eup %1993 }
 0x656   :  { %486 = vrot.lane.b32.xlu1 %v1994_v39, %s2202_s2 }
 0x667   :  { %v612_v60 = vpop.permute.xlu2 %611 }
 0x668   :  { %v617_v40 = vmul.f32 %v612_v60, %v2426_v48 }
 0x66a   :  { %v701_v41 = vpack.c.bf16 %v617_v40, %v617_v40 }
 0x66c   :  { %v705_v44 = vunpack.c.l.b16 %v701_v41 }
 0x66e   :  { %v707_v49 = vrot.slane %v705_v44, 2 }
 0x6b0   :  { %v614_v42 = vpop.permute.xlu0 %613 }
 0x6b1   :  { %v618_v43 = vmul.f32 %v614_v42, %v575_v5 }
 0x6b3   :  { %v621_v45 = vrot.slane %v618_v43, 7  ;;  %v702_v46 = vpack.c.bf16 %v618_v43, %v618_v43 }
 0x6b5   :  { %v706_v56 = vunpack.c.l.b16 %v702_v46  ;;  %v623_v38 = vsel %vm622_vm9, %v621_v45, %v617_v40  ;;  %vm821_vm9 = vcmask 1044484  }
 0x6b6   :  { %624 = vrot.lane.b32.xlu0 %v623_v38, %s2203_s27 }
 0x6b7   :  { %v708_v50 = vrot.slane %v706_v56, 1 }
 0x6b9   :  { %v709_v51 = vsel %vm199_vm10, %v708_v50, %v707_v49 }
 0x6ba   :  { %v710_v52 = vpack.c.b16 %v709_v51, %v709_v51 }
 0x6bc   :  { %711 = vrot.lane.b32.xlu2 %v710_v52, %s2203_s27 }
 0x6c8   :  { %v487_v53 = vpop.permute.xlu1 %486 }
 0x6c9   :  { %v2452_v48 = vmul.f32 %v487_v53, %v470_v22 }
 0x6cb   :  { %v627_v54 = vrot.slane %v2452_v48, 6 }
 0x6cd   :  { %628 = vrot.lane.b32.xlu1 %v627_v54, %s2202_s2 }
 0x716   :  { %v712_v55 = vpop.permute.xlu2 %711 }
 0x717   :  { %1883 = vmatmul.msk.bf16.vlgmr.msrb.gmra.mxu2 %vm94_vm11, %v712_v55 }
 0x718   :  { %1530 = vmatpush.bf16.msrb.mxu2 %v2272_v0 }
 0x71c   :  { %1531 = vmatpush.bf16.msrb.mxu2 %v2286_v6 }
 0x728   :  { %v625_v57 = vpop.permute.xlu0 %624 }
 0x73f   :  { %v629_v58 = vpop.permute.xlu1 %628 }
 0x740   :  { %v631_v59 = vsel %vm94_vm11, %v625_v57, %v629_v58 }
 0x741   :  { %v632_v61 = vpack.c.bf16 %v631_v59, %v631_v59 }
 0x743   :  { %v634_v2 = vrot.slane %v632_v61, 1 }
 0x745   :  { %1881 = vmatmul.msk.bf16.vlgmr.msrb.gmra.mxu3 %vm233_vm12, %v634_v2 }
 0x746   :  { %1450 = vmatpush.bf16.msrb.mxu3 %v2324_v62 }
 0x74a   :  { %1451 = vmatpush.bf16.msrb.mxu3 %v2330_v63 }
 0x74e   :  { %1452 = vmatpush.bf16.msrb.mxu3 %v2338_v1 }
 0x752   :  { %1453 = vmatpush.bf16.msrb.mxu3 %v2352_v19 }
 0x79a   :  { %v725_v3 = vpop.f32.mrf.mxu2 }
 0x79b   :  { %v730_v0 = vrot.slane %v725_v3, 5  ;;  %v731_v4 = vrot.slane %v725_v3, 6 }
 0x79d   :  { %v734_v6 = vadd.f32 %v730_v0, %v2296_v12  ;;  %v735_v5 = vadd.f32 %v731_v4, %v2298_v15 }
 0x79f   :  { %v736_v7 = vadd.f32 %v2303_v16, %v734_v6  ;;  %v737_v8 = vadd.f32 %v2303_v16, %v735_v5 }
 0x7a1   :  { %1995 = vtanh.f32 %v736_v7  ;;  %v1884_v20 = vmul.f32 -1.442695, %v736_v7  ;;  %v1885_v23 = vmul.f32 -1.442695, %v737_v8 }
 0x7a2   :  { %1997 = vtanh.f32 %v737_v8  ;;  %v727_v9 = vpop.f32.mrf.mxu2 }
 0x7a3   :  { %v780_v9 = vrot.slane %v2434_v28, 7 }
 0x7a7   :  { %v1996_v10 = vpop.eup %1995 }
 0x7a8   :  { %v1998_v11 = vpop.eup %1997  ;;  %788 = vrot.lane.b32.xlu2 %v1996_v10, %s2202_s2 }
 0x7a9   :  { %790 = vrot.lane.b32.xlu0 %v1998_v11, %s2202_s2 }
 0x7c8   :  { %v647_v13 = vpop.f32.mrf.mxu3 }
 0x7c9   :  { %v648_v14 = vadd.f32 %v2375_v24, %v647_v13 }
 0x7cb   :  { %1999 = vtanh.f32 %v648_v14  ;;  %v1882_v38 = vmul.f32 -1.442695, %v648_v14 }
 0x7cc   :  { %2001 = vpow2.f32 %v1884_v20 }
 0x7d0   :  { %v649_v17 = vpop.f32.mrf.mxu3 }
 0x7d1   :  { %v2000_v18 = vpop.eup %1999  ;;  %v781_v17 = vrot.slane %v2439_v33, 7 }
 0x7d2   :  { %673 = vrot.lane.b32.xlu1 %v2000_v18, %s2202_s2  ;;  %v2002_v16 = vpop.eup %2001 }
 0x7d3   :  { %v744_v21 = vadd.f32 1.0, %v2002_v16 }
 0x7d5   :  { %2003 = vrcp.f32 %v744_v21  ;;  %v757_v32 = vand.u32 2147483648, %v744_v21  ;;  %vm751_vm14 = vweird.f32 %v744_v21  ;;  %v755_v35 = vand.u32 2147483647, %v744_v21 }
 0x7d6   :  { %2005 = vpow2.f32 %v1885_v23 }
 0x7d7   :  { %v758_v36 = vor.u32 1.1754944e-38, %v757_v32  ;;  %vm756_vm0 = vcmp.eq.f32.partialorder %v755_v35, 8.507059e+37 }
 0x7db   :  { %v2004_v22 = vpop.eup %2003 }
 0x7dc   :  { %v747_v25 = vmul.f32 %v2004_v22, %v744_v21  ;;  %v2006_v29 = vpop.eup %2005  ;;  %vm752_vm13 = vweird.f32 %v2004_v22 }
 0x7dd   :  { %v745_v30 = vadd.f32 1.0, %v2006_v29  ;;  %vm753_vm15 = vmor %vm751_vm14, %vm752_vm13 }
 0x7de   :  { %v748_v26 = vsub.f32 1.0, %v747_v25 }
 0x7df   :  { %2007 = vrcp.f32 %v745_v30  ;;  %v772_v46 = vand.u32 2147483648, %v745_v30  ;;  %vm766_vm2 = vweird.f32 %v745_v30  ;;  %v770_v56 = vand.u32 2147483647, %v745_v30 }
 0x7e0   :  { %v749_v27 = vmul.f32 %v2004_v22, %v748_v26  ;;  %2009 = vpow2.f32 %v1882_v38 }
 0x7e1   :  { %v773_v50 = vor.u32 1.1754944e-38, %v772_v46  ;;  %vm771_vm4 = vcmp.eq.f32.partialorder %v770_v56, 8.507059e+37 }
 0x7e2   :  { %v750_v31 = vadd.f32 %v2004_v22, %v749_v27 }
 0x7e4   :  { %v754_v34 = vsel %vm753_vm15, %v2004_v22, %v750_v31 }
 0x7e5   :  { %v2473_v60 = vsel %vm756_vm0, %v758_v36, %v754_v34  ;;  %v2008_v41 = vpop.eup %2007 }
 0x7e6   :  { %v762_v42 = vmul.f32 %v2008_v41, %v745_v30  ;;  %vm767_vm1 = vweird.f32 %v2008_v41  ;;  %v2010_v54 = vpop.eup %2009  ;;  %v784_v10 = vmul.f32 %v780_v9, %v2473_v60 }
 0x7e7   :  { %vm768_vm3 = vmor %vm766_vm2, %vm767_vm1  ;;  %v654_v55 = vadd.f32 1.0, %v2010_v54 }
 0x7e8   :  { %v763_v43 = vsub.f32 1.0, %v762_v42 }
 0x7e9   :  { %2011 = vrcp.f32 %v654_v55  ;;  %v666_v3 = vand.u32 2147483648, %v654_v55  ;;  %vm660_vm6 = vweird.f32 %v654_v55  ;;  %v664_v0 = vand.u32 2147483647, %v654_v55 }
 0x7ea   :  { %v764_v44 = vmul.f32 %v2008_v41, %v763_v43 }
 0x7eb   :  { %v667_v6 = vor.u32 1.1754944e-38, %v666_v3  ;;  %vm665_vm8 = vcmp.eq.f32.partialorder %v664_v0, 8.507059e+37  ;;  %v2520_v3 = vld [vmem:[%s2797_s3] ss:$0 sm:$0xff]  ;;  %s1821_s3 = sshll.u32 %s2805_s11, 4  ;;  %s1822_s3 = int_to_ptr.hbm [resolvable:$true] %s1821_s3 }
 0x7ec   :  { %v765_v45 = vadd.f32 %v2008_v41, %v764_v44 }
 0x7ee   :  { %v769_v49 = vsel %vm768_vm3, %v2008_v41, %v765_v45 }
 0x7ef   :  { %v774_v51 = vsel %vm771_vm4, %v773_v50, %v769_v49  ;;  %v2012_v57 = vpop.eup %2011 }
 0x7f0   :  { %v656_v58 = vmul.f32 %v2012_v57, %v654_v55  ;;  %vm661_vm5 = vweird.f32 %v2012_v57  ;;  %v785_v18 = vmul.f32 %v781_v17, %v774_v51 }
 0x7f1   :  { %vm662_vm7 = vmor %vm660_vm6, %vm661_vm5 }
 0x7f2   :  { %v657_v59 = vsub.f32 1.0, %v656_v58 }
 0x7f4   :  { %v658_v61 = vmul.f32 %v2012_v57, %v657_v59 }
 0x7f6   :  { %v659_v2 = vadd.f32 %v2012_v57, %v658_v61 }
 0x7f8   :  { %v663_v4 = vsel %vm662_vm7, %v2012_v57, %v659_v2 }
 0x7f9   :  { %v668_v7 = vsel %vm665_vm8, %v667_v6, %v663_v4 }
 0x7fa   :  { %v671_v28 = vmul.f32 %v668_v7, %v2444_v37 }
 0x802   :  { %v789_v39 = vpop.permute.xlu2 %788 }
 0x803   :  { %v794_v40 = vmul.f32 %v789_v39, %v2473_v60 }
 0x805   :  { %798 = vrot.lane.b32.xlu2 %v794_v40, %s2203_s27 }
 0x81b   :  { %v791_v52 = vpop.permute.xlu0 %790 }
 0x81c   :  { %v795_v53 = vmul.f32 %v791_v52, %v774_v51 }
 0x81e   :  { %800 = vrot.lane.b32.xlu0 %v795_v53, %s2203_s27 }
 0x844   :  { %v674_v5 = vpop.permute.xlu1 %673 }
 0x845   :  { %v676_v8 = vmul.f32 %v674_v5, %v668_v7 }
 0x847   :  { %678 = vrot.lane.b32.xlu1 %v676_v8, %s2203_s27 }
 0x85f   :  { %v799_v11 = vpop.permute.xlu2 %798 }
 0x860   :  { %v2481_v13 = vadd.f32 %v799_v11, %v784_v10 }
 0x862   :  { %2013 = vtanh.f32 %v2481_v13 }
 0x868   :  { %v2014_v14 = vpop.eup %2013 }
 0x869   :  { %810 = vrot.lane.b32.xlu2 %v2014_v14, %s2202_s2 }
 0x890   :  { %v801_v20 = vpop.permute.xlu0 %800 }
 0x891   :  { %v2486_v16 = vadd.f32 %v801_v20, %v785_v18 }
 0x893   :  { %2015 = vtanh.f32 %v2486_v16 }
 0x899   :  { %v2016_v21 = vpop.eup %2015 }
 0x89a   :  { %812 = vrot.lane.b32.xlu0 %v2016_v21, %s2202_s2 }
 0x8b9   :  { %v679_v22 = vpop.permute.xlu1 %678 }
 0x8ba   :  { %v2491_v23 = vadd.f32 %v679_v22, %v671_v28 }
 0x8bc   :  { %2017 = vtanh.f32 %v2491_v23 }
 0x8c2   :  { %v2018_v25 = vpop.eup %2017 }
 0x8c3   :  { %684 = vrot.lane.b32.xlu1 %v2018_v25, %s2202_s2  ;;  %v811_v33 = vpop.permute.xlu2 %810 }
 0x8c4   :  { %v816_v26 = vmul.f32 %v811_v33, %v2473_v60  ;;  %v502_v60 = vadd.f32 %v2452_v48, %v2402_v47 }
 0x8c6   :  { %v906_v27 = vpack.c.bf16 %v816_v26, %v816_v26 }
 0x8c8   :  { %v910_v31 = vunpack.c.l.b16 %v906_v27 }
 0x8ca   :  { %v912_v36 = vrot.slane %v910_v31, 3 }
 0x90c   :  { %v813_v29 = vpop.permute.xlu0 %812 }
 0x90d   :  { %v817_v30 = vmul.f32 %v813_v29, %v774_v51 }
 0x90f   :  { %v820_v32 = vrot.slane %v817_v30, 7  ;;  %v907_v35 = vpack.c.bf16 %v817_v30, %v817_v30 }
 0x911   :  { %v911_v34 = vunpack.c.l.b16 %v907_v35  ;;  %v822_v37 = vsel %vm821_vm9, %v820_v32, %v816_v26  ;;  %vm1026_vm9 = vcmask 1045509  }
 0x912   :  { %823 = vrot.lane.b32.xlu0 %v822_v37, %s2203_s27 }
 0x913   :  { %v913_v39 = vrot.slane %v911_v34, 2 }
 0x915   :  { %v914_v40 = vsel %vm199_vm10, %v913_v39, %v912_v36 }
 0x916   :  { %v915_v41 = vpack.c.b16 %v914_v40, %v914_v40 }
 0x918   :  { %916 = vrot.lane.b32.xlu2 %v915_v41, %s2203_s27 }
 0x935   :  { %v685_v42 = vpop.permute.xlu1 %684 }
 0x936   :  { %v2501_v43 = vmul.f32 %v685_v42, %v668_v7 }
 0x938   :  { %v2504_v44 = vadd.f32 %v2501_v43, %v502_v60  ;;  %v826_v45 = vrot.slane %v2501_v43, 5 }
 0x93a   :  { %827 = vrot.lane.b32.xlu1 %v826_v45, %s2202_s2 }
 0x972   :  { %v917_v46 = vpop.permute.xlu2 %916 }
 0x973   :  { %1888 = vmatmul.msk.bf16.vlgmr.msra.gmra.mxu1 %vm94_vm11, %v917_v46 }
 0x984   :  { %v824_v56 = vpop.permute.xlu0 %823 }
 0x9ac   :  { %v828_v38 = vpop.permute.xlu1 %827 }
 0x9ad   :  { %v830_v49 = vsel %vm94_vm11, %v824_v56, %v828_v38 }
 0x9ae   :  { %v831_v50 = vpack.c.bf16 %v830_v49, %v830_v49 }
 0x9b0   :  { %v833_v51 = vshrl.u32 %v831_v50, 16  ;;  %v836_v52 = vshll.u32 %v831_v50, 16 }
 0x9b2   :  { %v835_v53 = vrot.slane %v833_v51, 1  ;;  %v838_v54 = vrot.slane %v836_v52, 2 }
 0x9b4   :  { %v839_v55 = vor.u32 %v838_v54, %v835_v53 }
 0x9b6   :  { %1886 = vmatmul.msk.bf16.vlgmr.msra.gmra.mxu0 %vm233_vm12, %v839_v55 }
 0x9b7   :  { %1656 = vmatpush.bf16.msra.mxu0 %v2324_v62 }
 0x9bb   :  { %1657 = vmatpush.bf16.msra.mxu0 %v2330_v63 }
 0x9bf   :  { %1658 = vmatpush.bf16.msra.mxu0 %v2338_v1 }
 0x9c3   :  { %1659 = vmatpush.bf16.msra.mxu0 %v2352_v19 }
 0x9f0   :  { %v930_v57 = vpop.f32.mrf.mxu1 }
 0x9f1   :  { %v935_v58 = vrot.slane %v930_v57, 4  ;;  %v936_v59 = vrot.slane %v930_v57, 5 }
 0x9f3   :  { %v939_v61 = vadd.f32 %v935_v58, %v2296_v12  ;;  %v940_v2 = vadd.f32 %v936_v59, %v2298_v15 }
 0x9f5   :  { %v941_v62 = vadd.f32 %v2520_v3, %v939_v61  ;;  %v942_v63 = vadd.f32 %v2520_v3, %v940_v2 }
 0x9f7   :  { %2019 = vtanh.f32 %v941_v62  ;;  %v1889_v4 = vmul.f32 -1.442695, %v941_v62  ;;  %v1890_v14 = vmul.f32 -1.442695, %v942_v63  ;;  %v985_v62 = vrot.slane %v2481_v13, 7 }
 0x9f8   :  { %2021 = vtanh.f32 %v942_v63  ;;  %v932_v1 = vpop.f32.mrf.mxu1 }
 0x9f9   :  { %2023 = vpow2.f32 %v1889_v4  ;;  %v986_v4 = vrot.slane %v2486_v16, 7 }
 0x9fd   :  { %v2020_v19 = vpop.eup %2019 }
 0x9fe   :  { %v2022_v0 = vpop.eup %2021  ;;  %993 = vrot.lane.b32.xlu2 %v2020_v19, %s2202_s2 }
 0x9ff   :  { %995 = vrot.lane.b32.xlu0 %v2022_v0, %s2202_s2  ;;  %v2024_v7 = vpop.eup %2023 }
 0xa00   :  { %v949_v8 = vadd.f32 1.0, %v2024_v7 }
 0xa02   :  { %v962_v25 = vand.u32 2147483648, %v949_v8  ;;  %vm956_vm14 = vweird.f32 %v949_v8 }
 0xa04   :  { %v963_v26 = vor.u32 1.1754944e-38, %v962_v25 }
 0xa33   :  { %v852_v6 = vpop.f32.mrf.mxu0 }
 0xa34   :  { %v853_v5 = vadd.f32 %v2375_v24, %v852_v6  ;;  %v960_v24 = vand.u32 2147483647, %v949_v8 }
 0xa36   :  { %2025 = vtanh.f32 %v853_v5  ;;  %vm961_vm0 = vcmp.eq.f32.partialorder %v960_v24, 8.507059e+37  ;;  %v1887_v46 = vmul.f32 -1.442695, %v853_v5 }
 0xa37   :  { %2027 = vrcp.f32 %v949_v8 }
 0xa38   :  { %2029 = vpow2.f32 %v1890_v14 }
 0xa3b   :  { %v854_v9 = vpop.f32.mrf.mxu0 }
 0xa3c   :  { %v2026_v10 = vpop.eup %2025 }
 0xa3d   :  { %878 = vrot.lane.b32.xlu1 %v2026_v10, %s2202_s2  ;;  %v2028_v11 = vpop.eup %2027 }
 0xa3e   :  { %v952_v17 = vmul.f32 %v2028_v11, %v949_v8  ;;  %v2030_v21 = vpop.eup %2029  ;;  %vm957_vm13 = vweird.f32 %v2028_v11 }
 0xa3f   :  { %v950_v28 = vadd.f32 1.0, %v2030_v21  ;;  %vm958_vm15 = vmor %vm956_vm14, %vm957_vm13 }
 0xa40   :  { %v953_v18 = vsub.f32 1.0, %v952_v17 }
 0xa41   :  { %2031 = vrcp.f32 %v950_v28  ;;  %v977_v36 = vand.u32 2147483648, %v950_v28  ;;  %vm971_vm2 = vweird.f32 %v950_v28  ;;  %v975_v39 = vand.u32 2147483647, %v950_v28 }
 0xa42   :  { %v954_v20 = vmul.f32 %v2028_v11, %v953_v18  ;;  %2033 = vpow2.f32 %v1887_v46 }
 0xa43   :  { %v978_v41 = vor.u32 1.1754944e-38, %v977_v36  ;;  %vm976_vm4 = vcmp.eq.f32.partialorder %v975_v39, 8.507059e+37 }
 0xa44   :  { %v955_v22 = vadd.f32 %v2028_v11, %v954_v20 }
 0xa46   :  { %v959_v33 = vsel %vm958_vm15, %v2028_v11, %v955_v22 }
 0xa47   :  { %v2528_v29 = vsel %vm961_vm0, %v963_v26, %v959_v33  ;;  %v2032_v31 = vpop.eup %2031 }
 0xa48   :  { %v967_v32 = vmul.f32 %v2032_v31, %v950_v28  ;;  %vm972_vm1 = vweird.f32 %v2032_v31  ;;  %v2034_v56 = vpop.eup %2033  ;;  %v989_v63 = vmul.f32 %v985_v62, %v2528_v29 }
 0xa49   :  { %vm973_vm3 = vmor %vm971_vm2, %vm972_vm1  ;;  %v859_v38 = vadd.f32 1.0, %v2034_v56 }
 0xa4a   :  { %v968_v35 = vsub.f32 1.0, %v967_v32 }
 0xa4b   :  { %2035 = vrcp.f32 %v859_v38  ;;  %v871_v54 = vand.u32 2147483648, %v859_v38  ;;  %vm865_vm6 = vweird.f32 %v859_v38  ;;  %v869_v55 = vand.u32 2147483647, %v859_v38 }
 0xa4c   :  { %v969_v34 = vmul.f32 %v2032_v31, %v968_v35 }
 0xa4d   :  { %v872_v58 = vor.u32 1.1754944e-38, %v871_v54  ;;  %vm870_vm8 = vcmp.eq.f32.partialorder %v869_v55, 8.507059e+37 }
 0xa4e   :  { %v970_v37 = vadd.f32 %v2032_v31, %v969_v34 }
 0xa50   :  { %v974_v40 = vsel %vm973_vm3, %v2032_v31, %v970_v37 }
 0xa51   :  { %v979_v60 = vsel %vm976_vm4, %v978_v41, %v974_v40  ;;  %v2036_v49 = vpop.eup %2035 }
 0xa52   :  { %v861_v50 = vmul.f32 %v2036_v49, %v859_v38  ;;  %vm866_vm5 = vweird.f32 %v2036_v49  ;;  %v990_v6 = vmul.f32 %v986_v4, %v979_v60 }
 0xa53   :  { %vm867_vm7 = vmor %vm865_vm6, %vm866_vm5 }
 0xa54   :  { %v862_v51 = vsub.f32 1.0, %v861_v50 }
 0xa56   :  { %v863_v52 = vmul.f32 %v2036_v49, %v862_v51 }
 0xa58   :  { %v994_v27 = vpop.permute.xlu2 %993  ;;  %v864_v53 = vadd.f32 %v2036_v49, %v863_v52 }
 0xa59   :  { %v999_v30 = vmul.f32 %v994_v27, %v2528_v29 }
 0xa5a   :  { %v868_v57 = vsel %vm867_vm7, %v2036_v49, %v864_v53 }
 0xa5b   :  { %1003 = vrot.lane.b32.xlu2 %v999_v30, %s2203_s27  ;;  %v873_v61 = vsel %vm870_vm8, %v872_v58, %v868_v57  ;;  %v2574_v58 = vld [vmem:[%s2799_s5] ss:$0 sm:$0xff]  ;;  %s2204_s5 = smov 96  }
 0xa5c   :  { %v876_v8 = vmul.f32 %v873_v61, %v2491_v23 }
 0xa71   :  { %v996_v42 = vpop.permute.xlu0 %995 }
 0xa72   :  { %v1000_v45 = vmul.f32 %v996_v42, %v979_v60 }
 0xa74   :  { %1005 = vrot.lane.b32.xlu0 %v1000_v45, %s2203_s27 }
 0xaaf   :  { %v879_v59 = vpop.permute.xlu1 %878 }
 0xab0   :  { %v881_v2 = vmul.f32 %v879_v59, %v873_v61 }
 0xab2   :  { %883 = vrot.lane.b32.xlu1 %v881_v2, %s2203_s27 }
 0xab5   :  { %v1004_v1 = vpop.permute.xlu2 %1003 }
 0xab6   :  { %v2536_v19 = vadd.f32 %v1004_v1, %v989_v63 }
 0xab8   :  { %2037 = vtanh.f32 %v2536_v19 }
 0xabe   :  { %v2038_v0 = vpop.eup %2037 }
 0xabf   :  { %1015 = vrot.lane.b32.xlu2 %v2038_v0, %s2202_s2 }
 0xae6   :  { %v1006_v5 = vpop.permute.xlu0 %1005 }
 0xae7   :  { %v2541_v7 = vadd.f32 %v1006_v5, %v990_v6 }
 0xae9   :  { %2039 = vtanh.f32 %v2541_v7 }
 0xaef   :  { %v2040_v13 = vpop.eup %2039 }
 0xaf0   :  { %1017 = vrot.lane.b32.xlu0 %v2040_v13, %s2202_s2 }
 0xb19   :  { %v1016_v16 = vpop.permute.xlu2 %1015 }
 0xb1a   :  { %v1021_v14 = vmul.f32 %v1016_v16, %v2528_v29 }
 0xb1c   :  { %v1105_v17 = vpack.c.bf16 %v1021_v14, %v1021_v14 }
 0xb1e   :  { %v1109_v21 = vunpack.c.l.b16 %v1105_v17 }
 0xb20   :  { %v1111_v24 = vrot.slane %v1109_v21, 4 }
 0xb24   :  { %v884_v9 = vpop.permute.xlu1 %883 }
 0xb25   :  { %v2546_v10 = vadd.f32 %v884_v9, %v876_v8 }
 0xb27   :  { %2041 = vtanh.f32 %v2546_v10 }
 0xb2d   :  { %v2042_v11 = vpop.eup %2041 }
 0xb2e   :  { %889 = vrot.lane.b32.xlu1 %v2042_v11, %s2202_s2 }
 0xb62   :  { %v1018_v18 = vpop.permute.xlu0 %1017 }
 0xb63   :  { %v1022_v20 = vmul.f32 %v1018_v18, %v979_v60 }
 0xb65   :  { %v1025_v28 = vrot.slane %v1022_v20, 7  ;;  %v1106_v22 = vpack.c.bf16 %v1022_v20, %v1022_v20 }
 0xb67   :  { %v1110_v25 = vunpack.c.l.b16 %v1106_v22  ;;  %v1027_v23 = vsel %vm1026_vm9, %v1025_v28, %v1021_v14  ;;  %vm1225_vm9 = vcmask 1046534  }
 0xb68   :  { %1028 = vrot.lane.b32.xlu0 %v1027_v23, %s2203_s27 }
 0xb69   :  { %v1112_v33 = vrot.slane %v1110_v25, 3 }
 0xb6b   :  { %v1113_v26 = vsel %vm199_vm10, %v1112_v33, %v1111_v24 }
 0xb6c   :  { %v1114_v27 = vpack.c.b16 %v1113_v26, %v1113_v26 }
 0xb6e   :  { %1115 = vrot.lane.b32.xlu2 %v1114_v27, %s2203_s27 }
 0xba0   :  { %v890_v30 = vpop.permute.xlu1 %889 }
 0xba1   :  { %v2554_v29 = vmul.f32 %v890_v30, %v873_v61 }
 0xba3   :  { %v2558_v31 = vadd.f32 %v2554_v29, %v2504_v44  ;;  %v1031_v32 = vrot.slane %v2554_v29, 4 }
 0xba5   :  { %1032 = vrot.lane.b32.xlu1 %v1031_v32, %s2202_s2 }
 0xbc8   :  { %v1116_v35 = vpop.permute.xlu2 %1115 }
 0xbc9   :  { %1893 = vmatmul.msk.bf16.vlgmr.msra.gmra.mxu2 %vm94_vm11, %v1116_v35 }
 0xbda   :  { %v1029_v34 = vpop.permute.xlu0 %1028 }
 0xc17   :  { %v1033_v37 = vpop.permute.xlu1 %1032 }
 0xc18   :  { %v1035_v36 = vsel %vm94_vm11, %v1029_v34, %v1033_v37 }
 0xc19   :  { %v1036_v39 = vpack.c.bf16 %v1035_v36, %v1035_v36 }
 0xc1b   :  { %v1038_v40 = vrot.slane %v1036_v39, 2  ;;  %v1184_v39 = vrot.slane %v2536_v19, 7 }
 0xc1d   :  { %1891 = vmatmul.msk.bf16.vlgmr.msra.gmra.mxu3 %vm233_vm12, %v1038_v40 }
 0xc4c   :  { %v1129_v41 = vpop.f32.mrf.mxu2 }
 0xc4d   :  { %v1134_v42 = vrot.slane %v1129_v41, 3  ;;  %v1135_v60 = vrot.slane %v1129_v41, 4 }
 0xc4f   :  { %v1138_v44 = vadd.f32 %v1134_v42, %v2296_v12  ;;  %v1139_v45 = vadd.f32 %v1135_v60, %v2298_v15 }
 0xc51   :  { %v1140_v46 = vadd.f32 %v2520_v3, %v1138_v44  ;;  %v1141_v56 = vadd.f32 %v2520_v3, %v1139_v45 }
 0xc53   :  { %2043 = vtanh.f32 %v1140_v46  ;;  %v1894_v51 = vmul.f32 -1.442695, %v1140_v46  ;;  %v1895_v55 = vmul.f32 -1.442695, %v1141_v56 }
 0xc54   :  { %2045 = vtanh.f32 %v1141_v56  ;;  %v1131_v38 = vpop.f32.mrf.mxu2 }
 0xc55   :  { %2047 = vpow2.f32 %v1894_v51 }
 0xc59   :  { %v2044_v49 = vpop.eup %2043 }
 0xc5a   :  { %v2046_v50 = vpop.eup %2045  ;;  %1192 = vrot.lane.b32.xlu2 %v2044_v49, %s2202_s2 }
 0xc5b   :  { %1194 = vrot.lane.b32.xlu0 %v2046_v50, %s2202_s2  ;;  %v2048_v52 = vpop.eup %2047 }
 0xc5c   :  { %v1148_v53 = vadd.f32 1.0, %v2048_v52  ;;  %v1185_v52 = vrot.slane %v2541_v7, 7 }
 0xc5e   :  { %2049 = vrcp.f32 %v1148_v53  ;;  %v1161_v5 = vand.u32 2147483648, %v1148_v53  ;;  %vm1155_vm14 = vweird.f32 %v1148_v53  ;;  %v1159_v13 = vand.u32 2147483647, %v1148_v53 }
 0xc60   :  { %v1162_v9 = vor.u32 1.1754944e-38, %v1161_v5  ;;  %vm1160_vm0 = vcmp.eq.f32.partialorder %v1159_v13, 8.507059e+37 }
 0xc64   :  { %v2050_v54 = vpop.eup %2049 }
 0xc65   :  { %v1151_v61 = vmul.f32 %v2050_v54, %v1148_v53  ;;  %vm1156_vm13 = vweird.f32 %v2050_v54 }
 0xc66   :  { %vm1157_vm15 = vmor %vm1155_vm14, %vm1156_vm13 }
 0xc67   :  { %v1152_v2 = vsub.f32 1.0, %v1151_v61 }
 0xc69   :  { %v1153_v1 = vmul.f32 %v2050_v54, %v1152_v2 }
 0xc6b   :  { %v1154_v6 = vadd.f32 %v2050_v54, %v1153_v1 }
 0xc6d   :  { %v1158_v8 = vsel %vm1157_vm15, %v2050_v54, %v1154_v6 }
 0xc6e   :  { %v2578_v16 = vsel %vm1160_vm0, %v1162_v9, %v1158_v8 }
 0xc6f   :  { %v1188_v40 = vmul.f32 %v1184_v39, %v2578_v16 }
 0xca0   :  { %v1051_v57 = vpop.f32.mrf.mxu3 }
 0xca1   :  { %v1052_v59 = vadd.f32 %v2574_v58, %v1051_v57 }
 0xca3   :  { %2051 = vtanh.f32 %v1052_v59  ;;  %v1892_v30 = vmul.f32 -1.442695, %v1052_v59 }
 0xca4   :  { %2053 = vpow2.f32 %v1895_v55 }
 0xca8   :  { %v1053_v62 = vpop.f32.mrf.mxu3 }
 0xca9   :  { %v2052_v63 = vpop.eup %2051 }
 0xcaa   :  { %v2054_v0 = vpop.eup %2053  ;;  %1077 = vrot.lane.b32.xlu1 %v2052_v63, %s2202_s2 }
 0xcab   :  { %v1149_v4 = vadd.f32 1.0, %v2054_v0 }
 0xcad   :  { %2055 = vrcp.f32 %v1149_v4  ;;  %v1176_v22 = vand.u32 2147483648, %v1149_v4  ;;  %vm1170_vm2 = vweird.f32 %v1149_v4  ;;  %v1174_v25 = vand.u32 2147483647, %v1149_v4 }
 0xcae   :  { %2057 = vpow2.f32 %v1892_v30 }
 0xcaf   :  { %v1177_v24 = vor.u32 1.1754944e-38, %v1176_v22  ;;  %vm1175_vm4 = vcmp.eq.f32.partialorder %v1174_v25, 8.507059e+37 }
 0xcb3   :  { %v2056_v17 = vpop.eup %2055 }
 0xcb4   :  { %v1193_v11 = vpop.permute.xlu2 %1192  ;;  %v1166_v18 = vmul.f32 %v2056_v17, %v1149_v4  ;;  %vm1171_vm1 = vweird.f32 %v2056_v17  ;;  %v2058_v32 = vpop.eup %2057 }
 0xcb5   :  { %v1198_v14 = vmul.f32 %v1193_v11, %v2578_v16  ;;  %vm1172_vm3 = vmor %vm1170_vm2, %vm1171_vm1  ;;  %v1058_v35 = vadd.f32 1.0, %v2058_v32 }
 0xcb6   :  { %v1167_v20 = vsub.f32 1.0, %v1166_v18 }
 0xcb7   :  { %1202 = vrot.lane.b32.xlu2 %v1198_v14, %s2203_s27  ;;  %2059 = vrcp.f32 %v1058_v35  ;;  %v1070_v45 = vand.u32 2147483648, %v1058_v35  ;;  %vm1064_vm6 = vweird.f32 %v1058_v35  ;;  %v1068_v46 = vand.u32 2147483647, %v1058_v35 }
 0xcb8   :  { %v1168_v21 = vmul.f32 %v2056_v17, %v1167_v20 }
 0xcb9   :  { %v1071_v49 = vor.u32 1.1754944e-38, %v1070_v45  ;;  %vm1069_vm8 = vcmp.eq.f32.partialorder %v1068_v46, 8.507059e+37 }
 0xcba   :  { %v1169_v28 = vadd.f32 %v2056_v17, %v1168_v21 }
 0xcbc   :  { %v1173_v23 = vsel %vm1172_vm3, %v2056_v17, %v1169_v28 }
 0xcbd   :  { %v1178_v33 = vsel %vm1175_vm4, %v1177_v24, %v1173_v23  ;;  %v2060_v34 = vpop.eup %2059 }
 0xcbe   :  { %v1060_v37 = vmul.f32 %v2060_v34, %v1058_v35  ;;  %vm1065_vm5 = vweird.f32 %v2060_v34  ;;  %v1189_v53 = vmul.f32 %v1185_v52, %v1178_v33 }
 0xcbf   :  { %vm1066_vm7 = vmor %vm1064_vm6, %vm1065_vm5 }
 0xcc0   :  { %v1061_v36 = vsub.f32 1.0, %v1060_v37 }
 0xcc2   :  { %v1062_v42 = vmul.f32 %v2060_v34, %v1061_v36 }
 0xcc4   :  { %v1063_v44 = vadd.f32 %v2060_v34, %v1062_v42 }
 0xcc6   :  { %v1067_v56 = vsel %vm1066_vm7, %v2060_v34, %v1063_v44 }
 0xcc7   :  { %v1072_v50 = vsel %vm1069_vm8, %v1071_v49, %v1067_v56 }
 0xcc8   :  { %v1075_v59 = vmul.f32 %v1072_v50, %v2546_v10 }
 0xccd   :  { %v1195_v26 = vpop.permute.xlu0 %1194 }
 0xcce   :  { %v1199_v27 = vmul.f32 %v1195_v26, %v1178_v33 }
 0xcd0   :  { %1204 = vrot.lane.b32.xlu0 %v1199_v27, %s2203_s27 }
 0xd11   :  { %v1203_v41 = vpop.permute.xlu2 %1202 }
 0xd12   :  { %v2585_v60 = vadd.f32 %v1203_v41, %v1188_v40 }
 0xd14   :  { %2061 = vtanh.f32 %v2585_v60 }
 0xd1a   :  { %v2062_v38 = vpop.eup %2061 }
 0xd1b   :  { %1214 = vrot.lane.b32.xlu2 %v2062_v38, %s2202_s2 }
 0xd1c   :  { %v1078_v19 = vpop.permute.xlu1 %1077 }
 0xd1d   :  { %v1080_v51 = vmul.f32 %v1078_v19, %v1072_v50 }
 0xd1f   :  { %1082 = vrot.lane.b32.xlu1 %v1080_v51, %s2203_s27 }
 0xd42   :  { %v1205_v54 = vpop.permute.xlu0 %1204 }
 0xd43   :  { %v2591_v55 = vadd.f32 %v1205_v54, %v1189_v53 }
 0xd45   :  { %2063 = vtanh.f32 %v2591_v55 }
 0xd4b   :  { %v2064_v57 = vpop.eup %2063 }
 0xd4c   :  { %1216 = vrot.lane.b32.xlu0 %v2064_v57, %s2202_s2 }
 0xd75   :  { %v1215_v7 = vpop.permute.xlu2 %1214 }
 0xd76   :  { %v1220_v63 = vmul.f32 %v1215_v7, %v2578_v16 }
 0xd78   :  { %v1310_v1 = vpack.c.bf16 %v1220_v63, %v1220_v63 }
 0xd7a   :  { %v1314_v6 = vunpack.c.l.b16 %v1310_v1 }
 0xd7c   :  { %v1316_v9 = vrot.slane %v1314_v6, 5 }
 0xd91   :  { %v1083_v61 = vpop.permute.xlu1 %1082 }
 0xd92   :  { %v2596_v2 = vadd.f32 %v1083_v61, %v1075_v59 }
 0xd94   :  { %2065 = vtanh.f32 %v2596_v2 }
 0xd9a   :  { %v2066_v62 = vpop.eup %2065 }
 0xd9b   :  { %1088 = vrot.lane.b32.xlu1 %v2066_v62, %s2202_s2 }
 0xdbe   :  { %v1217_v0 = vpop.permute.xlu0 %1216 }
 0xdbf   :  { %v1221_v4 = vmul.f32 %v1217_v0, %v1178_v33 }
 0xdc1   :  { %v1224_v5 = vrot.slane %v1221_v4, 7  ;;  %v1311_v13 = vpack.c.bf16 %v1221_v4, %v1221_v4 }
 0xdc3   :  { %v1315_v8 = vunpack.c.l.b16 %v1311_v13  ;;  %v1226_v10 = vsel %vm1225_vm9, %v1224_v5, %v1220_v63  ;;  %vm1430_vm9 = vcmask 1047559  }
 0xdc4   :  { %1227 = vrot.lane.b32.xlu0 %v1226_v10, %s2203_s27 }
 0xdc5   :  { %v1317_v11 = vrot.slane %v1315_v8, 4 }
 0xdc7   :  { %v1318_v14 = vsel %vm199_vm10, %v1317_v11, %v1316_v9 }
 0xdc8   :  { %v1319_v17 = vpack.c.b16 %v1318_v14, %v1318_v14 }
 0xdca   :  { %1320 = vrot.lane.b32.xlu2 %v1319_v17, %s2203_s27 }
 0xe0d   :  { %v1089_v18 = vpop.permute.xlu1 %1088 }
 0xe0e   :  { %v2604_v16 = vmul.f32 %v1089_v18, %v1072_v50 }
 0xe10   :  { %v2608_v20 = vadd.f32 %v2604_v16, %v2558_v31  ;;  %v1230_v21 = vrot.slane %v2604_v16, 3 }
 0xe12   :  { %1231 = vrot.lane.b32.xlu1 %v1230_v21, %s2202_s2 }
 0xe24   :  { %v1321_v28 = vpop.permute.xlu2 %1320 }
 0xe25   :  { %1898 = vmatmul.msk.bf16.vlgmr.msrb.gmra.mxu1 %vm94_vm11, %v1321_v28 }
 0xe36   :  { %v1228_v22 = vpop.permute.xlu0 %1227 }
 0xe84   :  { %v1232_v25 = vpop.permute.xlu1 %1231 }
 0xe85   :  { %v1234_v23 = vsel %vm94_vm11, %v1228_v22, %v1232_v25 }
 0xe86   :  { %v1235_v24 = vpack.c.bf16 %v1234_v23, %v1234_v23 }
 0xe88   :  { %v1237_v33 = vshrl.u32 %v1235_v24, 16  ;;  %v1240_v26 = vshll.u32 %v1235_v24, 16 }
 0xe8a   :  { %v1239_v27 = vrot.slane %v1237_v33, 2  ;;  %v1242_v30 = vrot.slane %v1240_v26, 3  ;;  %v1389_v33 = vrot.slane %v2585_v60, 7 }
 0xe8c   :  { %v1243_v32 = vor.u32 %v1242_v30, %v1239_v27 }
 0xe8e   :  { %1896 = vmatmul.msk.bf16.vlgmr.msrb.gmra.mxu0 %vm233_vm12, %v1243_v32 }
 0xea2   :  { %v1334_v31 = vpop.f32.mrf.mxu1 }
 0xea3   :  { %v1339_v35 = vrot.slane %v1334_v31, 2  ;;  %v1340_v34 = vrot.slane %v1334_v31, 3 }
 0xea5   :  { %v1343_v37 = vadd.f32 %v1339_v35, %v2296_v12  ;;  %v1344_v36 = vadd.f32 %v1340_v34, %v2298_v15 }
 0xea7   :  { %v1345_v39 = vadd.f32 %v2520_v3, %v1343_v37  ;;  %v1346_v40 = vadd.f32 %v2520_v3, %v1344_v36 }
 0xea9   :  { %2067 = vtanh.f32 %v1345_v39  ;;  %v1899_v45 = vmul.f32 -1.442695, %v1345_v39  ;;  %v1900_v49 = vmul.f32 -1.442695, %v1346_v40 }
 0xeaa   :  { %2069 = vtanh.f32 %v1346_v40  ;;  %v1336_v41 = vpop.f32.mrf.mxu1 }
 0xeab   :  { %2071 = vpow2.f32 %v1899_v45 }
 0xeaf   :  { %v2068_v42 = vpop.eup %2067 }
 0xeb0   :  { %v2070_v44 = vpop.eup %2069  ;;  %1397 = vrot.lane.b32.xlu2 %v2068_v42, %s2202_s2 }
 0xeb1   :  { %1399 = vrot.lane.b32.xlu0 %v2070_v44, %s2202_s2  ;;  %v2072_v46 = vpop.eup %2071 }
 0xeb2   :  { %v1353_v56 = vadd.f32 1.0, %v2072_v46 }
 0xeb4   :  { %2073 = vrcp.f32 %v1353_v56  ;;  %v1366_v57 = vand.u32 2147483648, %v1353_v56  ;;  %vm1360_vm14 = vweird.f32 %v1353_v56  ;;  %v1364_v59 = vand.u32 2147483647, %v1353_v56 }
 0xeb5   :  { %2075 = vpow2.f32 %v1900_v49 }
 0xeb6   :  { %v1367_v62 = vor.u32 1.1754944e-38, %v1366_v57  ;;  %vm1365_vm0 = vcmp.eq.f32.partialorder %v1364_v59, 8.507059e+37 }
 0xeba   :  { %v2074_v38 = vpop.eup %2073 }
 0xebb   :  { %v1356_v19 = vmul.f32 %v2074_v38, %v1353_v56  ;;  %v2076_v52 = vpop.eup %2075  ;;  %vm1361_vm13 = vweird.f32 %v2074_v38  ;;  %v1390_v56 = vrot.slane %v2591_v55, 7 }
 0xebc   :  { %v1354_v53 = vadd.f32 1.0, %v2076_v52  ;;  %vm1362_vm15 = vmor %vm1360_vm14, %vm1361_vm13 }
 0xebd   :  { %v1357_v50 = vsub.f32 1.0, %v1356_v19 }
 0xebe   :  { %2077 = vrcp.f32 %v1354_v53  ;;  %v1381_v14 = vand.u32 2147483648, %v1354_v53  ;;  %vm1375_vm2 = vweird.f32 %v1354_v53  ;;  %v1379_v17 = vand.u32 2147483647, %v1354_v53 }
 0xebf   :  { %v1358_v51 = vmul.f32 %v2074_v38, %v1357_v50 }
 0xec0   :  { %v1382_v21 = vor.u32 1.1754944e-38, %v1381_v14  ;;  %vm1380_vm4 = vcmp.eq.f32.partialorder %v1379_v17, 8.507059e+37 }
 0xec1   :  { %v1359_v54 = vadd.f32 %v2074_v38, %v1358_v51 }
 0xec3   :  { %v1363_v61 = vsel %vm1362_vm15, %v2074_v38, %v1359_v54 }
 0xec4   :  { %v2621_v63 = vsel %vm1365_vm0, %v1367_v62, %v1363_v61  ;;  %v2078_v6 = vpop.eup %2077 }
 0xec5   :  { %v1371_v5 = vmul.f32 %v2078_v6, %v1354_v53  ;;  %vm1376_vm1 = vweird.f32 %v2078_v6  ;;  %v1393_v26 = vmul.f32 %v1389_v33, %v2621_v63 }
 0xec6   :  { %vm1377_vm3 = vmor %vm1375_vm2, %vm1376_vm1 }
 0xec7   :  { %v1372_v10 = vsub.f32 1.0, %v1371_v5 }
 0xec9   :  { %v1373_v9 = vmul.f32 %v2078_v6, %v1372_v10 }
 0xecb   :  { %v1374_v11 = vadd.f32 %v2078_v6, %v1373_v9 }
 0xecd   :  { %v1378_v18 = vsel %vm1377_vm3, %v2078_v6, %v1374_v11 }
 0xece   :  { %v1383_v22 = vsel %vm1380_vm4, %v1382_v21, %v1378_v18 }
 0xecf   :  { %v1394_v38 = vmul.f32 %v1390_v56, %v1383_v22 }
 0xf0a   :  { %v1398_v7 = vpop.permute.xlu2 %1397 }
 0xf0b   :  { %v1403_v1 = vmul.f32 %v1398_v7, %v2621_v63  ;;  %v1256_v0 = vpop.f32.mrf.mxu0 }
 0xf0c   :  { %v1257_v4 = vadd.f32 %v2574_v58, %v1256_v0 }
 0xf0d   :  { %1407 = vrot.lane.b32.xlu2 %v1403_v1, %s2203_s27 }
 0xf0e   :  { %2079 = vtanh.f32 %v1257_v4  ;;  %v1897_v23 = vmul.f32 -1.442695, %v1257_v4 }
 0xf10   :  { %2081 = vpow2.f32 %v1897_v23 }
 0xf13   :  { %v1258_v13 = vpop.f32.mrf.mxu0 }
 0xf14   :  { %v2080_v8 = vpop.eup %2079 }
 0xf15   :  { %1282 = vrot.lane.b32.xlu1 %v2080_v8, %s2202_s2 }
 0xf16   :  { %v2082_v24 = vpop.eup %2081 }
 0xf17   :  { %v1263_v27 = vadd.f32 1.0, %v2082_v24 }
 0xf19   :  { %v1275_v40 = vand.u32 2147483648, %v1263_v27  ;;  %vm1269_vm6 = vweird.f32 %v1263_v27  ;;  %v1273_v60 = vand.u32 2147483647, %v1263_v27 }
 0xf1b   :  { %v1276_v42 = vor.u32 1.1754944e-38, %v1275_v40  ;;  %vm1274_vm8 = vcmp.eq.f32.partialorder %v1273_v60, 8.507059e+37 }
 0xf23   :  { %v1400_v28 = vpop.permute.xlu0 %1399 }
 0xf24   :  { %v1404_v25 = vmul.f32 %v1400_v28, %v1383_v22 }
 0xf26   :  { %1409 = vrot.lane.b32.xlu0 %v1404_v25, %s2203_s27 }
 0xf67   :  { %v1408_v30 = vpop.permute.xlu2 %1407 }
 0xf68   :  { %v2630_v32 = vadd.f32 %v1408_v30, %v1393_v26 }
 0xf6a   :  { %2083 = vtanh.f32 %v2630_v32 }
 0xf6b   :  { %2085 = vrcp.f32 %v1263_v27 }
 0xf70   :  { %v2084_v31 = vpop.eup %2083 }
 0xf71   :  { %v2086_v35 = vpop.eup %2085  ;;  %1419 = vrot.lane.b32.xlu2 %v2084_v31, %s2202_s2 }
 0xf72   :  { %v1265_v34 = vmul.f32 %v2086_v35, %v1263_v27  ;;  %vm1270_vm5 = vweird.f32 %v2086_v35 }
 0xf73   :  { %vm1271_vm7 = vmor %vm1269_vm6, %vm1270_vm5 }
 0xf74   :  { %v1266_v37 = vsub.f32 1.0, %v1265_v34 }
 0xf76   :  { %v1267_v36 = vmul.f32 %v2086_v35, %v1266_v37 }
 0xf78   :  { %v1268_v39 = vadd.f32 %v2086_v35, %v1267_v36 }
 0xf7a   :  { %v1272_v41 = vsel %vm1271_vm7, %v2086_v35, %v1268_v39 }
 0xf7b   :  { %v1277_v45 = vsel %vm1274_vm8, %v1276_v42, %v1272_v41  ;;  %vm1764_vm8 = vcmask 261127  }
 0xf7c   :  { %v1280_v51 = vmul.f32 %v1277_v45, %v2596_v2 }
 0xf87   :  { %v1283_v44 = vpop.permute.xlu1 %1282 }
 0xf88   :  { %v1285_v46 = vmul.f32 %v1283_v44, %v1277_v45 }
 0xf8a   :  { %1287 = vrot.lane.b32.xlu1 %v1285_v46, %s2203_s27 }
 0xf98   :  { %v1410_v49 = vpop.permute.xlu0 %1409 }
 0xf99   :  { %v2636_v19 = vadd.f32 %v1410_v49, %v1394_v38 }
 0xf9b   :  { %2087 = vtanh.f32 %v2636_v19 }
 0xfa1   :  { %v2088_v50 = vpop.eup %2087 }
 0xfa2   :  { %1421 = vrot.lane.b32.xlu0 %v2088_v50, %s2202_s2 }
 0xfcb   :  { %v1420_v55 = vpop.permute.xlu2 %1419 }
 0xfcc   :  { %v1425_v57 = vmul.f32 %v1420_v55, %v2621_v63 }
 0xfce   :  { %v1509_v59 = vpack.c.bf16 %v1425_v57, %v1425_v57 }
 0xfd0   :  { %v1513_v7 = vunpack.c.l.b16 %v1509_v59 }
 0xfd2   :  { %v1515_v6 = vrot.slane %v1513_v7, 6 }
 0xffc   :  { %v1288_v52 = vpop.permute.xlu1 %1287 }
 0xffd   :  { %v2641_v53 = vadd.f32 %v1288_v52, %v1280_v51 }
 0xfff   :  { %2089 = vtanh.f32 %v2641_v53 }
0x1005   :  { %v2090_v54 = vpop.eup %2089 }
0x1006   :  { %1293 = vrot.lane.b32.xlu1 %v2090_v54, %s2202_s2 }
0x1014   :  { %v1422_v61 = vpop.permute.xlu0 %1421 }
0x1015   :  { %v1426_v62 = vmul.f32 %v1422_v61, %v1383_v22 }
0x1017   :  { %v1429_v1 = vrot.slane %v1426_v62, 7  ;;  %v1510_v0 = vpack.c.bf16 %v1426_v62, %v1426_v62 }
0x1019   :  { %v1514_v4 = vunpack.c.l.b16 %v1510_v0  ;;  %v1431_v2 = vsel %vm1430_vm9, %v1429_v1, %v1425_v57  ;;  %vm297_vm9 = vcmask 253952  }
0x101a   :  { %1432 = vrot.lane.b32.xlu2 %v1431_v2, %s2203_s27 }
0x101b   :  { %v1516_v5 = vrot.slane %v1514_v4, 5 }
0x101d   :  { %v1517_v13 = vsel %vm199_vm10, %v1516_v5, %v1515_v6 }
0x101e   :  { %v1518_v8 = vpack.c.b16 %v1517_v13, %v1517_v13 }
0x1020   :  { %1519 = vrot.lane.b32.xlu1 %v1518_v8, %s2203_s27 }
0x1074   :  { %v1433_v17 = vpop.permute.xlu2 %1432 }
0x1078   :  { %v1294_v10 = vpop.permute.xlu1 %1293 }
0x1079   :  { %v2649_v63 = vmul.f32 %v1294_v10, %v1277_v45 }
0x107b   :  { %v1435_v9 = vrot.slane %v2649_v63, 2  ;;  %v2654_v11 = vadd.f32 %v2649_v63, %v2608_v20 }
0x107d   :  { %1436 = vrot.lane.b32.xlu0 %v1435_v9, %s2202_s2 }
0x1092   :  { %v1520_v14 = vpop.permute.xlu1 %1519 }
0x1093   :  { %1903 = vmatmul.msk.bf16.vlgmr.msrb.gmra.mxu2 %vm94_vm11, %v1520_v14 }
0x10ef   :  { %v1437_v18 = vpop.permute.xlu0 %1436 }
0x10f0   :  { %v1439_v21 = vsel %vm94_vm11, %v1433_v17, %v1437_v18 }
0x10f1   :  { %v1440_v28 = vpack.c.bf16 %v1439_v21, %v1439_v21 }
0x10f3   :  { %v1442_v22 = vrot.slane %v1440_v28, 3 }
0x10f5   :  { %1901 = vmatmul.msk.bf16.vlgmr.msrb.gmra.mxu3 %vm233_vm12, %v1442_v22 }
0x1116   :  { %v1533_v25 = vpop.f32.mrf.mxu2 }
0x1117   :  { %v1538_v23 = vrot.slane %v1533_v25, 1  ;;  %v1539_v24 = vrot.slane %v1533_v25, 2 }
0x1119   :  { %v1542_v33 = vadd.f32 %v1538_v23, %v2296_v12  ;;  %v1543_v20 = vadd.f32 %v1539_v24, %v2298_v15 }
0x111b   :  { %v1544_v26 = vadd.f32 %v2520_v3, %v1542_v33  ;;  %v1545_v27 = vadd.f32 %v2520_v3, %v1543_v20 }
0x111d   :  { %2091 = vtanh.f32 %v1544_v26  ;;  %v1904_v34 = vmul.f32 -1.442695, %v1544_v26  ;;  %v1905_v37 = vmul.f32 -1.442695, %v1545_v27 }
0x111e   :  { %2093 = vtanh.f32 %v1545_v27  ;;  %v1535_v30 = vpop.f32.mrf.mxu2  ;;  %v1588_v27 = vrot.slane %v2630_v32, 7 }
0x111f   :  { %2095 = vpow2.f32 %v1904_v34  ;;  %v1589_v30 = vrot.slane %v2636_v19, 7 }
0x1120   :  { %2097 = vpow2.f32 %v1905_v37 }
0x1123   :  { %v2092_v31 = vpop.eup %2091 }
0x1124   :  { %v2094_v35 = vpop.eup %2093  ;;  %1596 = vrot.lane.b32.xlu1 %v2092_v31, %s2202_s2 }
0x1125   :  { %1598 = vrot.lane.b32.xlu0 %v2094_v35, %s2202_s2  ;;  %v2096_v12 = vpop.eup %2095 }
0x1126   :  { %v2098_v36 = vpop.eup %2097  ;;  %v1552_v15 = vadd.f32 1.0, %v2096_v12 }
0x1127   :  { %v1553_v39 = vadd.f32 1.0, %v2098_v36 }
0x1128   :  { %2099 = vrcp.f32 %v1552_v15  ;;  %v1565_v54 = vand.u32 2147483648, %v1552_v15  ;;  %vm1559_vm14 = vweird.f32 %v1552_v15  ;;  %v1563_v57 = vand.u32 2147483647, %v1552_v15 }
0x1129   :  { %2101 = vrcp.f32 %v1553_v39  ;;  %v1580_v55 = vand.u32 2147483648, %v1553_v39  ;;  %vm1574_vm15 = vweird.f32 %v1553_v39  ;;  %v1578_v59 = vand.u32 2147483647, %v1553_v39 }
0x112a   :  { %v1566_v7 = vor.u32 1.1754944e-38, %v1565_v54  ;;  %vm1564_vm2 = vcmp.eq.f32.partialorder %v1563_v57, 8.507059e+37 }
0x112b   :  { %v1581_v1 = vor.u32 1.1754944e-38, %v1580_v55  ;;  %vm1579_vm3 = vcmp.eq.f32.partialorder %v1578_v59, 8.507059e+37 }
0x112e   :  { %v2100_v60 = vpop.eup %2099 }
0x112f   :  { %v2102_v41 = vpop.eup %2101  ;;  %v1555_v45 = vmul.f32 %v2100_v60, %v1552_v15  ;;  %vm1560_vm10 = vweird.f32 %v2100_v60 }
0x1130   :  { %v1570_v46 = vmul.f32 %v2102_v41, %v1553_v39  ;;  %vm1575_vm13 = vweird.f32 %v2102_v41  ;;  %vm1561_vm0 = vmor %vm1559_vm14, %vm1560_vm10 }
0x1131   :  { %v1556_v56 = vsub.f32 1.0, %v1555_v45  ;;  %vm1576_vm1 = vmor %vm1574_vm15, %vm1575_vm13  ;;  %vm1720_vm15 = vcmask 254976  }
0x1132   :  { %v1571_v38 = vsub.f32 1.0, %v1570_v46 }
0x1133   :  { %v1557_v49 = vmul.f32 %v2100_v60, %v1556_v56 }
0x1134   :  { %v1572_v50 = vmul.f32 %v2102_v41, %v1571_v38 }
0x1135   :  { %v1558_v51 = vadd.f32 %v2100_v60, %v1557_v49 }
0x1136   :  { %v1573_v52 = vadd.f32 %v2102_v41, %v1572_v50 }
0x1137   :  { %v1562_v61 = vsel %vm1561_vm0, %v2100_v60, %v1558_v51 }
0x1138   :  { %v1577_v62 = vsel %vm1576_vm1, %v2102_v41, %v1573_v52  ;;  %v1567_v4 = vsel %vm1564_vm2, %v1566_v7, %v1562_v61 }
0x1139   :  { %v1582_v6 = vsel %vm1579_vm3, %v1581_v1, %v1577_v62  ;;  %v1592_v31 = vmul.f32 %v1588_v27, %v1567_v4 }
0x113a   :  { %v1593_v35 = vmul.f32 %v1589_v30, %v1582_v6 }
0x1178   :  { %v1455_v40 = vpop.f32.mrf.mxu3 }
0x1179   :  { %v1456_v3 = vadd.f32 %v2574_v58, %v1455_v40 }
0x117b   :  { %2103 = vtanh.f32 %v1456_v3  ;;  %v1902_v8 = vmul.f32 -1.442695, %v1456_v3 }
0x117d   :  { %2105 = vpow2.f32 %v1902_v8 }
0x1180   :  { %v1457_v42 = vpop.f32.mrf.mxu3 }
0x1181   :  { %v2104_v44 = vpop.eup %2103 }
0x1182   :  { %1481 = vrot.lane.b32.xlu2 %v2104_v44, %s2202_s2 }
0x1183   :  { %v2106_v10 = vpop.eup %2105 }
0x1184   :  { %v1462_v9 = vadd.f32 1.0, %v2106_v10  ;;  %v1094_v10 = vperm.slane %v2604_v16, 0 }
0x1186   :  { %2107 = vrcp.f32 %v1462_v9  ;;  %v1474_v22 = vand.u32 2147483648, %v1462_v9  ;;  %vm1468_vm5 = vweird.f32 %v1462_v9  ;;  %v1472_v25 = vand.u32 2147483647, %v1462_v9 }
0x1188   :  { %v1475_v24 = vor.u32 1.1754944e-38, %v1474_v22  ;;  %vm1473_vm7 = vcmp.eq.f32.partialorder %v1472_v25, 8.507059e+37 }
0x118c   :  { %v2108_v14 = vpop.eup %2107 }
0x118d   :  { %v1464_v17 = vmul.f32 %v2108_v14, %v1462_v9  ;;  %vm1469_vm4 = vweird.f32 %v2108_v14 }
0x118e   :  { %vm1470_vm6 = vmor %vm1468_vm5, %vm1469_vm4 }
0x118f   :  { %v1465_v18 = vsub.f32 1.0, %v1464_v17 }
0x1191   :  { %v1466_v21 = vmul.f32 %v2108_v14, %v1465_v18 }
0x1193   :  { %v1467_v28 = vadd.f32 %v2108_v14, %v1466_v21 }
0x1195   :  { %v1471_v23 = vsel %vm1470_vm6, %v2108_v14, %v1467_v28 }
0x1196   :  { %v1597_v0 = vpop.permute.xlu1 %1596  ;;  %v1476_v20 = vsel %vm1473_vm7, %v1475_v24, %v1471_v23 }
0x1197   :  { %v1599_v2 = vpop.permute.xlu0 %1598  ;;  %v1602_v5 = vmul.f32 %v1597_v0, %v1567_v4  ;;  %v1479_v32 = vmul.f32 %v1476_v20, %v2641_v53 }
0x1198   :  { %v1603_v13 = vmul.f32 %v1599_v2, %v1582_v6  ;;  %v288_v2 = vrot.slane %v2402_v47, 1 }
0x1199   :  { %1606 = vrot.lane.b32.xlu1 %v1602_v5, %s2203_s27  ;;  %v894_v5 = vrot.slane %v2554_v29, 1 }
0x119a   :  { %1608 = vrot.lane.b32.xlu0 %v1603_v13, %s2203_s27 }
0x119b   :  { %v896_v13 = vperm.slane %v894_v5, 0 }
0x11dc   :  { %v1482_v33 = vpop.permute.xlu2 %1481 }
0x11dd   :  { %v1484_v26 = vmul.f32 %v1482_v33, %v1476_v20 }
0x11df   :  { %1486 = vrot.lane.b32.xlu2 %v1484_v26, %s2203_s27 }
0x120b   :  { %v1607_v34 = vpop.permute.xlu1 %1606 }
0x120c   :  { %v1609_v37 = vpop.permute.xlu0 %1608  ;;  %v2673_v12 = vadd.f32 %v1607_v34, %v1592_v31  ;;  %v491_v31 = vrot.slane %v2452_v48, 1 }
0x120d   :  { %v2675_v36 = vadd.f32 %v1609_v37, %v1593_v35  ;;  %v1093_v37 = vrot.slane %v2604_v16, 1 }
0x120e   :  { %2109 = vtanh.f32 %v2673_v12  ;;  %v493_v34 = vperm.slane %v491_v31, 0 }
0x120f   :  { %2111 = vtanh.f32 %v2675_v36 }
0x1214   :  { %v2110_v15 = vpop.eup %2109 }
0x1215   :  { %v2112_v39 = vpop.eup %2111  ;;  %1618 = vrot.lane.b32.xlu1 %v2110_v15, %s2202_s2 }
0x1216   :  { %1620 = vrot.lane.b32.xlu0 %v2112_v39, %s2202_s2  ;;  %v1095_v39 = vperm.slane %v1093_v37, 0 }
0x1239   :  { %v1487_v19 = vpop.permute.xlu2 %1486 }
0x123a   :  { %v2682_v40 = vadd.f32 %v1487_v19, %v1479_v32  ;;  %v690_v19 = vperm.slane %v2501_v43, 0 }
0x123c   :  { %2113 = vtanh.f32 %v2682_v40 }
0x1242   :  { %v2114_v3 = vpop.eup %2113 }
0x1243   :  { %1492 = vrot.lane.b32.xlu2 %v2114_v3, %s2202_s2 }
0x1287   :  { %v1619_v60 = vpop.permute.xlu1 %1618 }
0x1288   :  { %v1621_v41 = vpop.permute.xlu0 %1620  ;;  %v1624_v42 = vmul.f32 %v1619_v60, %v1567_v4 }
0x1289   :  { %v1625_v44 = vmul.f32 %v1621_v41, %v1582_v6  ;;  %v290_v6 = vperm.slane %v288_v2, 0 }
0x128a   :  { %1629 = vrot.lane.b32.xlu2 %v1624_v42, %s2203_s27 }
0x128b   :  { %v1628_v45 = vrot.slane %v1625_v44, 7 }
0x128d   :  { %1631 = vrot.lane.b32.xlu0 %v1628_v45, %s2203_s27  ;;  %v689_v45 = vrot.slane %v2501_v43, 1  ;;  %v895_v43 = vperm.slane %v2554_v29, 0 }
0x129d   :  { %v1493_v46 = vpop.permute.xlu2 %1492 }
0x129e   :  { %v2688_v56 = vmul.f32 %v1493_v46, %v1476_v20 }
0x12a0   :  { %v2692_v53 = vadd.f32 %v2688_v56, %v2654_v11  ;;  %v1497_v38 = vrot.slane %v2688_v56, 1 }
0x12a2   :  { %1635 = vrot.lane.b32.xlu1 %v1497_v38, %s2202_s2  ;;  %v1499_v8 = vperm.slane %v1497_v38, 0  ;;  %v691_v38 = vperm.slane %v689_v45, 0 }
0x12e4   :  { %v1630_v49 = vpop.permute.xlu2 %1629 }
0x12e5   :  { %1765 = vst.msk [vmem:[#allocation5 - $0x7] sm:$0x80] %vm1764_vm8, %v1630_v49 }
0x12ff   :  { %v1632_v50 = vpop.permute.xlu0 %1631 }
0x1300   :  { %1766 = vst.msk [vmem:[#allocation5 + $0x1] sm:$0x1] %vm297_vm9, %v1632_v50 }
0x1314   :  { %v1636_v51 = vpop.permute.xlu1 %1635 }
0x1315   :  { %v1638_v52 = vsel %vm94_vm11, %v1630_v49, %v1636_v51  ;;  %v1639_v54 = vsel %vm94_vm11, %v1632_v50, %v1636_v51  ;;  %v1298_v49 = vrot.slane %v2649_v63, 1  ;;  %v289_v51 = vperm.slane %v2402_v47, 0 }
0x1316   :  { %v1640_v55 = vpack.c.bf16 %v1639_v54, %v1638_v52  ;;  %v1498_v52 = vperm.slane %v2688_v56, 0  ;;  %v1299_v56 = vperm.slane %v2649_v63, 0  ;;  %v1727_v63 = vld [vmem:[%s2800_s6 + $0x18] sm:$0xff] }
0x1317   :  { %v1300_v50 = vperm.slane %v1298_v49, 0  ;;  %1916 = vmatpush.msra.mxu3 %v1727_v63  ;;  %1750 = vmatpush.msra.mxu1 %v1727_v63 }
0x1318   :  { %v1642_v11 = vshrl.u32 %v1640_v55, 16  ;;  %v1645_v57 = vshll.u32 %v1640_v55, 16 }
0x131a   :  { %v1644_v59 = vrot.slane %v1642_v11, 3  ;;  %v1647_v61 = vrot.slane %v1645_v57, 4 }
0x131c   :  { %v1648_v62 = vor.u32 %v1647_v61, %v1644_v59 }
0x131e   :  { %1906 = vmatmul.msk.bf16.vlgmr.msra.gmra.mxu0 %vm233_vm12, %v1648_v62 }
0x139b   :  { %v1661_v7 = vpop.f32.mrf.mxu0 }
0x139c   :  { %v1662_v1 = vadd.f32 %v2574_v58, %v1661_v7  ;;  %v492_v58 = vperm.slane %v2452_v48, 0  ;;  %v1774_v7 = vrot.slane %v2675_v36, 7  ;;  %v1725_v36 = vld [vmem:[%s2800_s6 + $0x8] sm:$0xff] }
0x139e   :  { %2115 = vtanh.f32 %v1662_v1  ;;  %v1907_v9 = vmul.f32 -1.442695, %v1662_v1 }
0x13a0   :  { %2117 = vpow2.f32 %v1907_v9 }
0x13a3   :  { %v1663_v0 = vpop.f32.mrf.mxu0 }
0x13a4   :  { %v2116_v4 = vpop.eup %2115  ;;  %v1726_v0 = vld [vmem:[%s2800_s6 + $0x10] sm:$0xff] }
0x13a5   :  { %1687 = vrot.lane.b32.xlu2 %v2116_v4, %s2202_s2  ;;  %1917 = vmatpush.msra.mxu3 %v1726_v0  ;;  %v1724_v4 = vld [vmem:[%s2800_s6] sm:$0xff] }
0x13a6   :  { %v2118_v14 = vpop.eup %2117  ;;  %1751 = vmatpush.msra.mxu1 %v1726_v0 }
0x13a7   :  { %v1668_v17 = vadd.f32 1.0, %v2118_v14  ;;  %1918 = vmatpush.msra.mxu3 %v1725_v36 }
0x13a8   :  { %1752 = vmatpush.msra.mxu1 %v1725_v36 }
0x13a9   :  { %2119 = vrcp.f32 %v1668_v17  ;;  %v1680_v23 = vand.u32 2147483648, %v1668_v17  ;;  %vm1674_vm10 = vweird.f32 %v1668_v17  ;;  %v1678_v24 = vand.u32 2147483647, %v1668_v17  ;;  %1919 = vmatpush.msra.mxu3 %v1724_v4 }
0x13aa   :  { %1753 = vmatpush.msra.mxu1 %v1724_v4 }
0x13ab   :  { %v1681_v20 = vor.u32 1.1754944e-38, %v1680_v23  ;;  %vm1679_vm14 = vcmp.eq.f32.partialorder %v1678_v24, 8.507059e+37 }
0x13ad   :  { %293 = vrot.lane.b32.xlu2 %v290_v6, %s2203_s27 }
0x13af   :  { %v2120_v18 = vpop.eup %2119 }
0x13b0   :  { %v1670_v21 = vmul.f32 %v2120_v18, %v1668_v17  ;;  %vm1675_vm12 = vweird.f32 %v2120_v18 }
0x13b1   :  { %vm1676_vm13 = vmor %vm1674_vm10, %vm1675_vm12 }
0x13b2   :  { %v1671_v28 = vsub.f32 1.0, %v1670_v21 }
0x13b4   :  { %v1672_v22 = vmul.f32 %v2120_v18, %v1671_v28 }
0x13b5   :  { %899 = vrot.lane.b32.xlu2 %v896_v13, %s2203_s27 }
0x13b6   :  { %v1673_v25 = vadd.f32 %v2120_v18, %v1672_v22 }
0x13b8   :  { %v1677_v33 = vsel %vm1676_vm13, %v2120_v18, %v1673_v25  ;;  %v1930_v18 = vld [vmem:[%s2801_s7] ss:$0 sm:$0xff] }
0x13b9   :  { %v1682_v27 = vsel %vm1679_vm14, %v1681_v20, %v1677_v33 }
0x13ba   :  { %v1685_v16 = vmul.f32 %v1682_v27, %v2682_v40 }
0x13bd   :  { %1502 = vrot.lane.b32.xlu2 %v1499_v8, %s2203_s27 }
0x13c5   :  { %494 = vrot.lane.b32.xlu2 %v492_v58, %s2203_s27 }
0x13cd   :  { %1096 = vrot.lane.b32.xlu2 %v1094_v10, %s2203_s27 }
0x13ff   :  { %v1688_v26 = vpop.permute.xlu2 %1687 }
0x1400   :  { %v1690_v30 = vmul.f32 %v1688_v26, %v1682_v27 }
0x1402   :  { %1692 = vrot.lane.b32.xlu0 %v1690_v30, %s2203_s27 }
0x1407   :  { %v294_v35 = vpop.permute.xlu2 %293 }
0x1408   :  { %299 = vst.msk [vmem:[#allocation2 + $0x8] sm:$0x1] %vm297_vm9, %v294_v35 }
0x140a   :  { %496 = vrot.lane.b32.xlu0 %v493_v34, %s2203_s27 }
0x140f   :  { %v900_v15 = vpop.permute.xlu2 %899 }
0x1410   :  { %904 = vst.msk [vmem:[#allocation2 + $0xb] sm:$0x1] %vm297_vm9, %v900_v15 }
0x1412   :  { %1098 = vrot.lane.b32.xlu0 %v1095_v39, %s2203_s27 }
0x1417   :  { %v1503_v32 = vpop.permute.xlu2 %1502 }
0x1418   :  { %1507 = vst.msk [vmem:[#allocation2 + $0xe] sm:$0x1] %vm297_vm9, %v1503_v32 }
0x141a   :  { %692 = vrot.lane.b32.xlu0 %v690_v19, %s2203_s27 }
0x141f   :  { %v495_v48 = vpop.permute.xlu2 %494 }
0x1420   :  { %500 = vst.msk [vmem:[#allocation2 + $0x1] sm:$0x1] %vm297_vm9, %v495_v48 }
0x1427   :  { %v1097_v3 = vpop.permute.xlu2 %1096 }
0x1428   :  { %1102 = vst.msk [vmem:[#allocation2 + $0x4] sm:$0x1] %vm297_vm9, %v1097_v3 }
0x1474   :  { %v1693_v60 = vpop.permute.xlu0 %1692 }
0x1475   :  { %v1695_v41 = vadd.f32 %v1693_v60, %v1685_v16 }
0x1477   :  { %2121 = vtanh.f32 %v1695_v41 }
0x147c   :  { %v497_v42 = vpop.permute.xlu0 %496 }
0x147d   :  { %v2122_v44 = vpop.eup %2121  ;;  %501 = vst.msk [vmem:[#allocation2 + $0x9] sm:$0x1] %vm297_vm9, %v497_v42 }
0x147e   :  { %1698 = vrot.lane.b32.xlu1 %v2122_v44, %s2202_s2 }
0x1484   :  { %v1099_v46 = vpop.permute.xlu0 %1098 }
0x1485   :  { %1103 = vst.msk [vmem:[#allocation2 + $0xc] sm:$0x1] %vm297_vm9, %v1099_v46 }
0x1486   :  { %694 = vrot.lane.b32.xlu1 %v691_v38, %s2203_s27 }
0x148c   :  { %v693_v40 = vpop.permute.xlu0 %692 }
0x148d   :  { %698 = vst.msk [vmem:[#allocation2 + $0x2] sm:$0x1] %vm297_vm9, %v693_v40 }
0x148e   :  { %1303 = vrot.lane.b32.xlu1 %v1300_v50, %s2203_s27 }
0x1496   :  { %291 = vrot.lane.b32.xlu1 %v289_v51, %s2203_s27 }
0x149e   :  { %897 = vrot.lane.b32.xlu1 %v895_v43, %s2203_s27 }
0x14a6   :  { %1500 = vrot.lane.b32.xlu1 %v1498_v52, %s2203_s27 }
0x14f0   :  { %v1699_v54 = vpop.permute.xlu1 %1698 }
0x14f1   :  { %v1701_v55 = vmul.f32 %v1699_v54, %v1682_v27 }
0x14f3   :  { %v1704_v11 = vperm.slane %v1701_v55, 0  ;;  %v1714_v57 = vadd.f32 %v1701_v55, %v2692_v53  ;;  %v1703_v59 = vrot.slane %v1701_v55, 1 }
0x14f5   :  { %1706 = vrot.lane.b32.xlu2 %v1704_v11, %s2203_s27  ;;  %v1715_v61 = vmul.f32 0.125, %v1714_v57  ;;  %v1705_v47 = vperm.slane %v1703_v59, 0 }
0x14f7   :  { %1717 = vrot.lane.b32.xlu1 %v1715_v61, %s2203_s27  ;;  %1708 = vrot.lane.b32.xlu0 %v1705_v47, %s2203_s27 }
0x14f8   :  { %v695_v29 = vpop.permute.xlu1 %694 }
0x14f9   :  { %699 = vst.msk [vmem:[#allocation2 + $0xa] sm:$0x1] %vm297_vm9, %v695_v29 }
0x14fd   :  { %1775 = vrot.lane.b32.xlu2 %v2673_v12, %s2204_s5 }
0x14ff   :  { %1784 = vrot.lane.b32.xlu1 %v1695_v41, %s2204_s5  ;;  %1301 = vrot.lane.b32.xlu0 %v1299_v56, %s2203_s27 }
0x1500   :  { %v1304_v53 = vpop.permute.xlu1 %1303 }
0x1501   :  { %1308 = vst.msk [vmem:[#allocation2 + $0xd] sm:$0x1] %vm297_vm9, %v1304_v53 }
0x1507   :  { %1767 = vrot.lane.b32.xlu0 %v1701_v55, %s2203_s27 }
0x1508   :  { %v292_v62 = vpop.permute.xlu1 %291 }
0x1509   :  { %298 = vst.msk [vmem:[#allocation2] sm:$0x1] %vm297_vm9, %v292_v62 }
0x150f   :  { %1777 = vrot.lane.b32.xlu0 %v1774_v7, %s2204_s5 }
0x1510   :  { %v898_v1 = vpop.permute.xlu1 %897 }
0x1511   :  { %903 = vst.msk [vmem:[#allocation2 + $0x3] sm:$0x1] %vm297_vm9, %v898_v1 }
0x1518   :  { %v1501_v12 = vpop.permute.xlu1 %1500 }
0x1519   :  { %1506 = vst.msk [vmem:[#allocation2 + $0x6] sm:$0x1] %vm297_vm9, %v1501_v12 }
0x154f   :  { %v1707_v2 = vpop.permute.xlu2 %1706 }
0x1550   :  { %1712 = vst.msk [vmem:[#allocation2 + $0x7] sm:$0x1] %vm297_vm9, %v1707_v2 }
0x1557   :  { %v1776_v6 = vpop.permute.xlu2 %1775 }
0x1558   :  { %1781 = vst.msk [vmem:[#allocation7 - $0x7] sm:$0x80] %vm1764_vm8, %v1776_v6 }
0x1569   :  { %v1709_v5 = vpop.permute.xlu0 %1708  ;;  %v1718_v13 = vpop.permute.xlu1 %1717 }
0x156a   :  { %1713 = vst.msk [vmem:[#allocation2 + $0xf] sm:$0x1] %vm297_vm9, %v1709_v5 }
0x156b   :  { %1721 = vst.msk [vmem:[#allocation3] sm:$0x3] %vm1720_vm15, %v1718_v13 }
0x156c   :  { %1799 = dma.vmem_to_hbm [thread:$0]  %s1795_s4, 32, %s1797_s15, [#allocation4]  }
0x1571   :  { %v1302_v8 = vpop.permute.xlu0 %1301  ;;  %v1785_v58 = vpop.permute.xlu1 %1784  ;;  %v1723_v10 = vld [vmem:[#allocation2 + $0x8] sm:$0xff] }
0x1572   :  { %1307 = vst.msk [vmem:[#allocation2 + $0x5] sm:$0x1] %vm297_vm9, %v1302_v8  ;;  %1909 = vmatmul.msk.f32.vlgmr.msra.gmra.mxu3 %vm94_vm11, %v1723_v10 }
0x1573   :  { %1788 = vst.msk [vmem:[#allocation7 + $0x2] sm:$0x3] %vm1720_vm15, %v1785_v58 }
0x1579   :  { %v1768_v9 = vpop.permute.xlu0 %1767  ;;  %v1722_v14 = vld [vmem:[#allocation2] sm:$0xff] }
0x157a   :  { %1771 = vst.msk [vmem:[#allocation5 + $0x2] sm:$0x3] %vm1720_vm15, %v1768_v9  ;;  %1908 = vmatmul.msk.f32.vlgmr.msra.gmra.mxu1 %vm94_vm11, %v1722_v14  ;;  %vm1761_vm11 = vcmask 15360  }
0x157b   :  { %1814 = dma.vmem_to_hbm [thread:$0]  %s1807_s30, 64, %s1809_s28, [#allocation6], %s2203_s27, %s2203_s27, %s2206_s12  }
0x1581   :  { %v1778_v17 = vpop.permute.xlu0 %1777 }
0x1582   :  { %1782 = vst.msk [vmem:[#allocation7 + $0x1] sm:$0x1] %vm297_vm9, %v1778_v17 }
0x1583   :  { %1827 = dma.vmem_to_hbm [thread:$0]  %s1820_s17, 64, %s1822_s3, [#allocation6], %s2203_s27, %s2203_s27, %s2206_s12  }
0x15f5   :  { %v1758_v21 = vpop.f32.mrf.mxu3 }
0x15f6   :  { %v1759_v28 = vadd.f32 %v1930_v18, %v1758_v21 }
0x15f7   :  { %v1755_v22 = vpop.f32.mrf.mxu1 }
0x15f8   :  { %1763 = vst.msk [vmem:[%s2803_s9 + $0x8] sm:$0xff] %vm1761_vm11, %v1759_v28  ;;  %v1756_v25 = vadd.f32 %v1930_v18, %v1755_v22 }
0x15fa   :  { %1762 = vst.msk [vmem:[%s2803_s9] sm:$0xff] %vm1761_vm11, %v1756_v25 }
0x15fb   :  { %2197 = dma.done.wait [#allocation4], 32  }
0x15fc   :  { %2198 = vsyncadd [#allocation4], 4294967264 }
0x15fd   :  { %2199 = dma.done.wait [#allocation6], 128  }
0x15fe   :  { %2200 = vsyncadd [#allocation6], 4294967168 }
0x15ff   :  { %1842 = vsyncpa [#allocation4], 1 }
0x1600   :  { %1843 = vsyncpa [#allocation6], 1 }

</bundles_post_ra>
